<compile_context>
chip_gen: v6e
topology: v6e:2x2x1
jax: 0.10.0
libtpu: 0.0.40
codegen_flags: <defaults>
</compile_context>

<pallas_src>
import math
import jax
import jax.numpy as jnp
from jax.experimental import pallas as pl
from jax.experimental.pallas import tpu as pltpu

# ----------------------------- model dimensions ------------------------------
VOCAB = 50        # synthetic vocab
S = 8             # sequence length (power of two -> mask uses a shift, not a divide)
B = 2             # batch
H = 32            # hidden_size
NH = 4            # attention heads
DH = H // NH      # head dim
FFN = 4 * H       # DistilBERT FFN expansion
NLAYERS = 2       # small encoder depth
NCLUSTERS = 3
NREC = 5          # num_recommendations

BS = B * S
CPAD = 128        # lane-padded cluster dim (zero centroids + -1e9 score mask beyond NCLUSTERS)
OUT_PAD = 128     # lane-padded recommendation dim (zero weight columns beyond NREC)

SEQ_SHIFT = S.bit_length() - 1
assert S == (1 << SEQ_SHIFT), "S must be a power of two for the in-kernel mask shift"

_VMEM = pl.BlockSpec(memory_space=pltpu.MemorySpace.VMEM)

# rough advisory cost estimate for XLA's scheduler (optional, per review)
_FLOPS = (2 * BS * (VOCAB * H
                    + NLAYERS * (3 * H * H + NH * 2 * BS * DH + H * H + 2 * H * FFN))
          + 2 * B * (H * H + 2 * H * CPAD + H * OUT_PAD))
_TRANS = NLAYERS * (NH * BS * BS + BS * FFN) + B * CPAD
_BYTES = 160 * 1024


# ------------------------------ in-kernel helpers -----------------------------
def _layernorm(x, g, b, eps=1e-12):
    mu = jnp.mean(x, axis=-1, keepdims=True)
    var = jnp.mean((x - mu) ** 2, axis=-1, keepdims=True)
    return (x - mu) * jax.lax.rsqrt(var + eps) * g + b


def _gelu(x):
    # TODO(synk): HF DistilBERT uses the exact erf GELU; the tanh approximation is used
    # here because it lowers cleanly to the EUP (tanh) on all TPU generations.
    return 0.5 * x * (1.0 + jnp.tanh(0.7978845608028654 * (x + 0.044715 * x * x * x)))


# ------------------------------ fused Pallas kernel ----------------------------
def fused_forward_kernel(
        ids_ref, keyv_ref, wemb_ref, pos_ref, embg_ref, embb_ref,
        wqkv_ref, bqkv_ref, wo_ref, bo_ref,
        ln1g_ref, ln1b_ref, w1_ref, b1_ref, w2_ref, b2_ref, ln2g_ref, ln2b_ref,
        mhaw_ref, mhab_ref, cent_t_ref, cent_ref, cmask_ref, clsw_ref, clsb_ref,
        rec_ref, cw_ref):
    f32, bf16 = jnp.float32, jnp.bfloat16

    # ---- token embedding gather as a one-hot MXU dot (exact; f32 operands) ----
    ids = ids_ref[...]                                                  # (B*S, 1) int32
    onehot = (jax.lax.broadcasted_iota(jnp.int32, (BS, VOCAB), 1) == ids).astype(f32)
    x = jnp.dot(onehot, wemb_ref[...], preferred_element_type=f32) + pos_ref[...]
    x = _layernorm(x, embg_ref[...], embb_ref[...])                     # (B*S, H) f32

    # ---- block-diagonal additive attention mask, hoisted out of the layer loop ----
    # mask[q,k] = 0 if (q,k) are in the same sequence AND key k is a valid token, else -1e9
    q_idx = jax.lax.broadcasted_iota(jnp.int32, (BS, BS), 0)
    k_idx = jax.lax.broadcasted_iota(jnp.int32, (BS, BS), 1)
    same_seq = jnp.right_shift(q_idx, SEQ_SHIFT) == jnp.right_shift(k_idx, SEQ_SHIFT)
    keep = jnp.logical_and(same_seq, keyv_ref[...] > 0)                 # (B*S, B*S) bool
    mask_add = jnp.where(keep, 0.0, -1e9).astype(f32)

    # ---- transformer encoder layers (static unroll, weights stacked on a layer axis) ----
    for l in range(NLAYERS):
        # fused QKV projection: single (B*S, H) @ (H, 3H) MXU push
        # (1/sqrt(DH) is pre-folded into the Q columns of wqkv / bqkv at init)
        qkv = jnp.dot(x.astype(bf16), wqkv_ref[l],
                      preferred_element_type=f32) + bqkv_ref[l]         # (B*S, 3H) f32
        qkv_bf = qkv.astype(bf16)

        ctx_heads = []
        for h in range(NH):
            q_h = qkv_bf[:, h * DH:(h + 1) * DH]                        # (B*S, DH)
            k_h = qkv_bf[:, H + h * DH:H + (h + 1) * DH]                # (B*S, DH)
            v_h = qkv_bf[:, 2 * H + h * DH:2 * H + (h + 1) * DH]        # (B*S, DH)
            # scores over ALL B*S keys; the block-diagonal mask removes cross-sequence
            # and padded-key entries before the softmax (exact).
            s_h = jax.lax.dot_general(q_h, k_h, (((1,), (1,)), ((), ())),
                                      preferred_element_type=f32)       # (B*S, B*S)
            s_h = s_h + mask_add
            m = jnp.max(s_h, axis=-1, keepdims=True)
            e = jnp.exp(s_h - m)
            p = e * pl.reciprocal(jnp.sum(e, axis=-1, keepdims=True), approx=True)
            ctx_heads.append(jnp.dot(p.astype(bf16), v_h,
                                     preferred_element_type=f32))       # (B*S, DH)

        # output projection: one lane concat + ONE (B*S,H)@(H,H) matmul, bias added once
        ctx = jnp.concatenate(ctx_heads, axis=-1).astype(bf16)          # (B*S, H)
        attn = jnp.dot(ctx, wo_ref[l], preferred_element_type=f32) + bo_ref[l]

        x = _layernorm(x + attn, ln1g_ref[l], ln1b_ref[l])

        ff = _gelu(jnp.dot(x.astype(bf16), w1_ref[l],
                           preferred_element_type=f32) + b1_ref[l])
        ff = jnp.dot(ff.astype(bf16), w2_ref[l],
                     preferred_element_type=f32) + b2_ref[l]
        x = _layernorm(x + ff, ln2g_ref[l], ln2b_ref[l])

    # ---- ClusteringAttention + classifier head, evaluated only on the B CLS rows ----
    # nn.MultiheadAttention over a length-1 sequence: softmax over a single key == 1, so
    # attn_output = out_proj(v_proj(x)); W = Wv@Wo, b = bv@Wo + bo folded on host (exact).
    x_cls = jnp.concatenate([x[b * S:b * S + 1, :] for b in range(B)], axis=0)  # (B, H)
    attn = jnp.dot(x_cls.astype(bf16), mhaw_ref[...],
                   preferred_element_type=f32) + mhab_ref[...]          # (B, H)
    # 1/sqrt(H) pre-folded into cent_t; cmask suppresses the zero-padded centroid lanes
    scores = jnp.dot(attn.astype(bf16), cent_t_ref[...],
                     preferred_element_type=f32) + cmask_ref[...]       # (B, CPAD)
    sm = jnp.max(scores, axis=-1, keepdims=True)
    es = jnp.exp(scores - sm)
    cw = es / jnp.sum(es, axis=-1, keepdims=True)    # exact division: user-visible probs
    ctx = jnp.dot(cw.astype(bf16), cent_ref[...],
                  preferred_element_type=f32)                           # (B, H), pad rows are 0
    fused = attn + ctx
    rec_ref[...] = (jnp.dot(fused.astype(bf16), clsw_ref[...],
                            preferred_element_type=f32) + clsb_ref[...]).astype(rec_ref.dtype)
    cw_ref[...] = cw.astype(cw_ref.dtype)


# ----------------------------- parameter creation -----------------------------
def make_params(key):
    def nrm(k, shape, scale=0.02):
        return (scale * jax.random.normal(k, shape)).astype(jnp.float32)

    keys = iter(jax.random.split(key, 64))
    inv_sqrt_dh = 1.0 / math.sqrt(DH)

    p = {
        'word_emb': nrm(next(keys), (VOCAB, H)),                        # f32: exact one-hot gather
        'pos_emb': jnp.tile(nrm(next(keys), (S, H)), (B, 1)),           # pre-tiled to (B*S, H)
        'emb_ln_g': jnp.ones((1, H), jnp.float32),
        'emb_ln_b': jnp.zeros((1, H), jnp.float32),
    }

    wqkv, bqkv, wo, bo = [], [], [], []
    ln1g, ln1b, w1, b1, w2, b2, ln2g, ln2b = ([] for _ in range(8))
    for _ in range(NLAYERS):
        wq, wk, wv = (nrm(next(keys), (H, H)) for _ in range(3))
        bq = bk = bv = jnp.zeros((1, H), jnp.float32)
        # fold the attention scale 1/sqrt(DH) into the Q projection (once, at init)
        wqkv.append(jnp.concatenate([wq * inv_sqrt_dh, wk, wv], axis=1))   # (H, 3H)
        bqkv.append(jnp.concatenate([bq * inv_sqrt_dh, bk, bv], axis=1))   # (1, 3H)
        wo.append(nrm(next(keys), (H, H)))      # (in=H, out=H); in-dim rows = head-concat order
        bo.append(jnp.zeros((1, H), jnp.float32))
        ln1g.append(jnp.ones((1, H), jnp.float32)); ln1b.append(jnp.zeros((1, H), jnp.float32))
        w1.append(nrm(next(keys), (H, FFN)));       b1.append(jnp.zeros((1, FFN), jnp.float32))
        w2.append(nrm(next(keys), (FFN, H)));       b2.append(jnp.zeros((1, H), jnp.float32))
        ln2g.append(jnp.ones((1, H), jnp.float32)); ln2b.append(jnp.zeros((1, H), jnp.float32))

    stack = lambda xs: jnp.stack(xs, axis=0)
    p['wqkv'] = stack(wqkv).astype(jnp.bfloat16); p['bqkv'] = stack(bqkv)
    p['wo'] = stack(wo).astype(jnp.bfloat16);     p['bo'] = stack(bo)
    p['ln1g'] = stack(ln1g); p['ln1b'] = stack(ln1b)
    p['w1'] = stack(w1).astype(jnp.bfloat16);     p['b1'] = stack(b1)
    p['w2'] = stack(w2).astype(jnp.bfloat16);     p['b2'] = stack(b2)
    p['ln2g'] = stack(ln2g); p['ln2b'] = stack(ln2b)

    # ClusteringAttention: fold length-1 MHA (value proj + out proj) into one linear (exact).
    mha_wv = nrm(next(keys), (H, H)); mha_bv = jnp.zeros((1, H), jnp.float32)
    mha_wo = nrm(next(keys), (H, H)); mha_bo = jnp.zeros((1, H), jnp.float32)
    p['mha_w'] = (mha_wv @ mha_wo).astype(jnp.bfloat16)
    p['mha_b'] = (mha_bv @ mha_wo + mha_bo).astype(jnp.float32)

    cent = jax.random.normal(next(keys), (NCLUSTERS, H)).astype(jnp.float32)
    cent_pad = jnp.zeros((CPAD, H), jnp.float32).at[:NCLUSTERS].set(cent)
    p['cent'] = cent_pad.astype(jnp.bfloat16)                                # (CPAD, H)
    # fold the 1/sqrt(H) score scale into the transposed centroids (once, at init)
    p['cent_t'] = (cent_pad.T * (1.0 / math.sqrt(H))).astype(jnp.bfloat16)   # (H, CPAD)
    p['cmask'] = jnp.where(jnp.arange(CPAD) < NCLUSTERS, 0.0, -1e9
                           ).astype(jnp.float32)[None, :]                    # (1, CPAD)

    cls_w = nrm(next(keys), (H, NREC)); cls_b = jnp.zeros((1, NREC), jnp.float32)
    p['cls_w'] = jnp.zeros((H, OUT_PAD), jnp.float32).at[:, :NREC].set(cls_w).astype(jnp.bfloat16)
    p['cls_b'] = jnp.zeros((1, OUT_PAD), jnp.float32).at[:, :NREC].set(cls_b)
    return p


# --------------------------------- forward ------------------------------------
def text_recommender_forward(input_ids, attention_mask, params):
    # Kernel consumes raw int token ids / attention mask; embedding gather, mask build
    # and CLS-row selection all happen in-kernel (no host-side gather / strided slices).
    ids2d = input_ids.reshape(B * S, 1).astype(jnp.int32)
    keyv = attention_mask.reshape(1, B * S).astype(jnp.int32)

    kernel_args = (
        ids2d, keyv, params['word_emb'], params['pos_emb'],
        params['emb_ln_g'], params['emb_ln_b'],
        params['wqkv'], params['bqkv'], params['wo'], params['bo'],
        params['ln1g'], params['ln1b'], params['w1'], params['b1'],
        params['w2'], params['b2'], params['ln2g'], params['ln2b'],
        params['mha_w'], params['mha_b'], params['cent_t'], params['cent'],
        params['cmask'], params['cls_w'], params['cls_b'])

    # TODO(synk): on v7x a grid=(B,) with dimension_semantics=("parallel",) would shard the
    # two sequences across the two TensorCores; kept grid-less here because v5e/v6e have a
    # single TC and the per-grid-step overhead would outweigh the gain at this size.
    rec_pad, cw_pad = pl.pallas_call(
        fused_forward_kernel,
        out_shape=(jax.ShapeDtypeStruct((B, OUT_PAD), jnp.float32),
                   jax.ShapeDtypeStruct((B, CPAD), jnp.float32)),
        in_specs=[_VMEM] * len(kernel_args),
        out_specs=(_VMEM, _VMEM),
        cost_estimate=pl.CostEstimate(flops=_FLOPS, transcendentals=_TRANS,
                                      bytes_accessed=_BYTES),
    )(*kernel_args)

    # strip lane padding (contiguous lane slices only; the strided [::S] CLS gather is gone)
    recommendations = rec_pad[:, :NREC]
    cluster_weights = cw_pad[:, :NCLUSTERS]
    return recommendations, cluster_weights


if __name__ == "__main__":
    key = jax.random.PRNGKey(0)
    k_param, k_ids = jax.random.split(key)
    params = make_params(k_param)

    input_ids = jax.random.randint(k_ids, (B, S), 0, VOCAB, dtype=jnp.int32)
    # first sequence full length, second padded by 2 tokens
    valid_lens = jnp.array([[S], [S - 2]], dtype=jnp.int32)
    attention_mask = (jnp.arange(S)[None, :] < valid_lens).astype(jnp.int32)

    fwd = jax.jit(text_recommender_forward)
    recs, cw = fwd(input_ids, attention_mask, params)
    jax.block_until_ready((recs, cw))
    assert recs.shape == (B, NREC) and cw.shape == (B, NCLUSTERS)
    print("KERNEL_OK")
</pallas_src>

<mosaic_0001>
module attributes {stable_mosaic.version = 11 : i64} {
  func.func @fused_forward_kernel(%arg0: memref<16x1xi32, #tpu.memory_space<vmem>>, %arg1: memref<1x16xi32, #tpu.memory_space<vmem>>, %arg2: memref<50x32xf32, #tpu.memory_space<vmem>>, %arg3: memref<16x32xf32, #tpu.memory_space<vmem>>, %arg4: memref<1x32xf32, #tpu.memory_space<vmem>>, %arg5: memref<1x32xf32, #tpu.memory_space<vmem>>, %arg6: memref<2x32x96xbf16, #tpu.memory_space<vmem>>, %arg7: memref<2x1x96xf32, #tpu.memory_space<vmem>>, %arg8: memref<2x32x32xbf16, #tpu.memory_space<vmem>>, %arg9: memref<2x1x32xf32, #tpu.memory_space<vmem>>, %arg10: memref<2x1x32xf32, #tpu.memory_space<vmem>>, %arg11: memref<2x1x32xf32, #tpu.memory_space<vmem>>, %arg12: memref<2x32x128xbf16, #tpu.memory_space<vmem>>, %arg13: memref<2x1x128xf32, #tpu.memory_space<vmem>>, %arg14: memref<2x128x32xbf16, #tpu.memory_space<vmem>>, %arg15: memref<2x1x32xf32, #tpu.memory_space<vmem>>, %arg16: memref<2x1x32xf32, #tpu.memory_space<vmem>>, %arg17: memref<2x1x32xf32, #tpu.memory_space<vmem>>, %arg18: memref<32x32xbf16, #tpu.memory_space<vmem>>, %arg19: memref<1x32xf32, #tpu.memory_space<vmem>>, %arg20: memref<32x128xbf16, #tpu.memory_space<vmem>>, %arg21: memref<128x32xbf16, #tpu.memory_space<vmem>>, %arg22: memref<1x128xf32, #tpu.memory_space<vmem>>, %arg23: memref<32x128xbf16, #tpu.memory_space<vmem>>, %arg24: memref<1x128xf32, #tpu.memory_space<vmem>>, %arg25: memref<2x128xf32, #tpu.memory_space<vmem>>, %arg26: memref<2x128xf32, #tpu.memory_space<vmem>>) attributes {dimension_semantics = [], scalar_prefetch = 0 : i64, scratch_operands = 0 : i64, tpu.core_type = #tpu.core_type<tc>} {
    %c0 = arith.constant 0 : index
    %c0_0 = arith.constant 0 : index
    %0 = vector.load %arg0[%c0, %c0_0] : memref<16x1xi32, #tpu.memory_space<vmem>>, vector<16x1xi32>
    %1 = tpu.iota {dimensions = array<i32: 1>} : vector<16x50xi32>
    %2 = vector.broadcast %0 : vector<16x1xi32> to vector<16x50xi32>
    %3 = arith.cmpi eq, %1, %2 : vector<16x50xi32>
    %4 = arith.extui %3 : vector<16x50xi1> to vector<16x50xi32>
    %5 = arith.sitofp %4 : vector<16x50xi32> to vector<16x50xf32>
    %c0_1 = arith.constant 0 : index
    %c0_2 = arith.constant 0 : index
    %6 = vector.load %arg2[%c0_1, %c0_2] : memref<50x32xf32, #tpu.memory_space<vmem>>, vector<50x32xf32>
    %cst = arith.constant dense<0.000000e+00> : vector<16x32xf32>
    %7 = tpu.matmul %5, %6, %cst {dimension_numbers = #tpu.dot_dimension_numbers<[1], [0], [0], [1], [0, 0, 1, 1], [], []>} : vector<16x50xf32>, vector<50x32xf32>, vector<16x32xf32> -> vector<16x32xf32>
    %c0_3 = arith.constant 0 : index
    %c0_4 = arith.constant 0 : index
    %8 = vector.load %arg3[%c0_3, %c0_4] : memref<16x32xf32, #tpu.memory_space<vmem>>, vector<16x32xf32>
    %9 = arith.addf %7, %8 : vector<16x32xf32>
    %c0_5 = arith.constant 0 : index
    %c0_6 = arith.constant 0 : index
    %10 = vector.load %arg4[%c0_5, %c0_6] : memref<1x32xf32, #tpu.memory_space<vmem>>, vector<1x32xf32>
    %c0_7 = arith.constant 0 : index
    %c0_8 = arith.constant 0 : index
    %11 = vector.load %arg5[%c0_7, %c0_8] : memref<1x32xf32, #tpu.memory_space<vmem>>, vector<1x32xf32>
    %cst_9 = arith.constant dense<0.000000e+00> : vector<16xf32>
    %12 = vector.multi_reduction <add>, %9, %cst_9 [1] : vector<16x32xf32> to vector<16xf32>
    %13 = vector.shape_cast %12 : vector<16xf32> to vector<16x1xf32>
    %cst_10 = arith.constant 3.200000e+01 : f32
    %14 = vector.broadcast %cst_10 : f32 to vector<16x1xf32>
    %15 = arith.divf %13, %14 : vector<16x1xf32>
    %16 = vector.broadcast %15 : vector<16x1xf32> to vector<16x32xf32>
    %17 = arith.subf %9, %16 : vector<16x32xf32>
    %18 = arith.mulf %17, %17 : vector<16x32xf32>
    %cst_11 = arith.constant dense<0.000000e+00> : vector<16xf32>
    %19 = vector.multi_reduction <add>, %18, %cst_11 [1] : vector<16x32xf32> to vector<16xf32>
    %20 = vector.shape_cast %19 : vector<16xf32> to vector<16x1xf32>
    %cst_12 = arith.constant 3.200000e+01 : f32
    %21 = vector.broadcast %cst_12 : f32 to vector<16x1xf32>
    %22 = arith.divf %20, %21 : vector<16x1xf32>
    %23 = vector.broadcast %15 : vector<16x1xf32> to vector<16x32xf32>
    %24 = arith.subf %9, %23 : vector<16x32xf32>
    %cst_13 = arith.constant 9.99999996E-13 : f32
    %25 = vector.broadcast %cst_13 : f32 to vector<16x1xf32>
    %26 = arith.addf %22, %25 : vector<16x1xf32>
    %27 = math.rsqrt %26 : vector<16x1xf32>
    %28 = vector.broadcast %27 : vector<16x1xf32> to vector<16x32xf32>
    %29 = arith.mulf %24, %28 : vector<16x32xf32>
    %30 = vector.broadcast %10 : vector<1x32xf32> to vector<16x32xf32>
    %31 = arith.mulf %29, %30 : vector<16x32xf32>
    %32 = vector.broadcast %11 : vector<1x32xf32> to vector<16x32xf32>
    %33 = arith.addf %31, %32 : vector<16x32xf32>
    %34 = tpu.iota {dimensions = array<i32: 0>} : vector<16x16xi32>
    %35 = tpu.iota {dimensions = array<i32: 1>} : vector<16x16xi32>
    %c3_i32 = arith.constant 3 : i32
    %36 = vector.broadcast %c3_i32 : i32 to vector<16x16xi32>
    %37 = arith.shrsi %34, %36 : vector<16x16xi32>
    %c3_i32_14 = arith.constant 3 : i32
    %38 = vector.broadcast %c3_i32_14 : i32 to vector<16x16xi32>
    %39 = arith.shrsi %35, %38 : vector<16x16xi32>
    %40 = arith.cmpi eq, %37, %39 : vector<16x16xi32>
    %c0_15 = arith.constant 0 : index
    %c0_16 = arith.constant 0 : index
    %41 = vector.load %arg1[%c0_15, %c0_16] : memref<1x16xi32, #tpu.memory_space<vmem>>, vector<1x16xi32>
    %c0_i32 = arith.constant 0 : i32
    %42 = vector.broadcast %c0_i32 : i32 to vector<1x16xi32>
    %43 = arith.cmpi sgt, %41, %42 : vector<1x16xi32>
    %44 = vector.broadcast %43 : vector<1x16xi1> to vector<16x16xi1>
    %45 = arith.andi %40, %44 : vector<16x16xi1>
    %cst_17 = arith.constant 0.000000e+00 : f32
    %cst_18 = arith.constant -1.000000e+09 : f32
    %46 = vector.broadcast %cst_17 : f32 to vector<16x16xf32>
    %47 = vector.broadcast %cst_18 : f32 to vector<16x16xf32>
    %48 = arith.select %45, %46, %47 : vector<16x16xi1>, vector<16x16xf32>
    %49 = arith.truncf %33 : vector<16x32xf32> to vector<16x32xbf16>
    %c0_19 = arith.constant 0 : index
    %c0_20 = arith.constant 0 : index
    %c0_21 = arith.constant 0 : index
    %50 = vector.load %arg6[%c0_19, %c0_20, %c0_21] : memref<2x32x96xbf16, #tpu.memory_space<vmem>>, vector<1x32x96xbf16>
    %51 = vector.shape_cast %50 : vector<1x32x96xbf16> to vector<32x96xbf16>
    %cst_22 = arith.constant dense<0.000000e+00> : vector<16x96xf32>
    %52 = tpu.matmul %49, %51, %cst_22 {dimension_numbers = #tpu.dot_dimension_numbers<[1], [0], [0], [1], [0, 0, 1, 1], [], []>} : vector<16x32xbf16>, vector<32x96xbf16>, vector<16x96xf32> -> vector<16x96xf32>
    %c0_23 = arith.constant 0 : index
    %c0_24 = arith.constant 0 : index
    %c0_25 = arith.constant 0 : index
    %53 = vector.load %arg7[%c0_23, %c0_24, %c0_25] : memref<2x1x96xf32, #tpu.memory_space<vmem>>, vector<1x1x96xf32>
    %54 = vector.shape_cast %53 : vector<1x1x96xf32> to vector<1x96xf32>
    %55 = vector.broadcast %54 : vector<1x96xf32> to vector<16x96xf32>
    %56 = arith.addf %52, %55 : vector<16x96xf32>
    %57 = arith.truncf %56 : vector<16x96xf32> to vector<16x96xbf16>
    %58 = vector.extract_strided_slice %57 {offsets = [0, 0], sizes = [16, 8], strides = [1, 1]} : vector<16x96xbf16> to vector<16x8xbf16>
    %59 = vector.extract_strided_slice %57 {offsets = [0, 32], sizes = [16, 8], strides = [1, 1]} : vector<16x96xbf16> to vector<16x8xbf16>
    %60 = vector.extract_strided_slice %57 {offsets = [0, 64], sizes = [16, 8], strides = [1, 1]} : vector<16x96xbf16> to vector<16x8xbf16>
    %cst_26 = arith.constant dense<0.000000e+00> : vector<16x16xf32>
    %61 = tpu.matmul %58, %59, %cst_26 {dimension_numbers = #tpu.dot_dimension_numbers<[1], [1], [0], [0], [0, 0, 1, 0], [], []>} : vector<16x8xbf16>, vector<16x8xbf16>, vector<16x16xf32> -> vector<16x16xf32>
    %62 = arith.addf %61, %48 : vector<16x16xf32>
    %cst_27 = arith.constant dense<0xFF800000> : vector<16xf32>
    %63 = vector.multi_reduction <maximumf>, %62, %cst_27 [1] : vector<16x16xf32> to vector<16xf32>
    %64 = vector.shape_cast %63 : vector<16xf32> to vector<16x1xf32>
    %65 = vector.broadcast %64 : vector<16x1xf32> to vector<16x16xf32>
    %66 = arith.subf %62, %65 : vector<16x16xf32>
    %67 = math.exp %66 : vector<16x16xf32>
    %cst_28 = arith.constant dense<0.000000e+00> : vector<16xf32>
    %68 = vector.multi_reduction <add>, %67, %cst_28 [1] : vector<16x16xf32> to vector<16xf32>
    %69 = vector.shape_cast %68 : vector<16xf32> to vector<16x1xf32>
    %70 = tpu.reciprocal %69 {approx = true} : vector<16x1xf32> -> vector<16x1xf32>
    %71 = vector.broadcast %70 : vector<16x1xf32> to vector<16x16xf32>
    %72 = arith.mulf %67, %71 : vector<16x16xf32>
    %73 = arith.truncf %72 : vector<16x16xf32> to vector<16x16xbf16>
    %cst_29 = arith.constant dense<0.000000e+00> : vector<16x8xf32>
    %74 = tpu.matmul %73, %60, %cst_29 {dimension_numbers = #tpu.dot_dimension_numbers<[1], [0], [0], [1], [0, 0, 1, 1], [], []>} : vector<16x16xbf16>, vector<16x8xbf16>, vector<16x8xf32> -> vector<16x8xf32>
    %75 = vector.extract_strided_slice %57 {offsets = [0, 8], sizes = [16, 8], strides = [1, 1]} : vector<16x96xbf16> to vector<16x8xbf16>
    %76 = vector.extract_strided_slice %57 {offsets = [0, 40], sizes = [16, 8], strides = [1, 1]} : vector<16x96xbf16> to vector<16x8xbf16>
    %77 = vector.extract_strided_slice %57 {offsets = [0, 72], sizes = [16, 8], strides = [1, 1]} : vector<16x96xbf16> to vector<16x8xbf16>
    %cst_30 = arith.constant dense<0.000000e+00> : vector<16x16xf32>
    %78 = tpu.matmul %75, %76, %cst_30 {dimension_numbers = #tpu.dot_dimension_numbers<[1], [1], [0], [0], [0, 0, 1, 0], [], []>} : vector<16x8xbf16>, vector<16x8xbf16>, vector<16x16xf32> -> vector<16x16xf32>
    %79 = arith.addf %78, %48 : vector<16x16xf32>
    %cst_31 = arith.constant dense<0xFF800000> : vector<16xf32>
    %80 = vector.multi_reduction <maximumf>, %79, %cst_31 [1] : vector<16x16xf32> to vector<16xf32>
    %81 = vector.shape_cast %80 : vector<16xf32> to vector<16x1xf32>
    %82 = vector.broadcast %81 : vector<16x1xf32> to vector<16x16xf32>
    %83 = arith.subf %79, %82 : vector<16x16xf32>
    %84 = math.exp %83 : vector<16x16xf32>
    %cst_32 = arith.constant dense<0.000000e+00> : vector<16xf32>
    %85 = vector.multi_reduction <add>, %84, %cst_32 [1] : vector<16x16xf32> to vector<16xf32>
    %86 = vector.shape_cast %85 : vector<16xf32> to vector<16x1xf32>
    %87 = tpu.reciprocal %86 {approx = true} : vector<16x1xf32> -> vector<16x1xf32>
    %88 = vector.broadcast %87 : vector<16x1xf32> to vector<16x16xf32>
    %89 = arith.mulf %84, %88 : vector<16x16xf32>
    %90 = arith.truncf %89 : vector<16x16xf32> to vector<16x16xbf16>
    %cst_33 = arith.constant dense<0.000000e+00> : vector<16x8xf32>
    %91 = tpu.matmul %90, %77, %cst_33 {dimension_numbers = #tpu.dot_dimension_numbers<[1], [0], [0], [1], [0, 0, 1, 1], [], []>} : vector<16x16xbf16>, vector<16x8xbf16>, vector<16x8xf32> -> vector<16x8xf32>
    %92 = vector.extract_strided_slice %57 {offsets = [0, 16], sizes = [16, 8], strides = [1, 1]} : vector<16x96xbf16> to vector<16x8xbf16>
    %93 = vector.extract_strided_slice %57 {offsets = [0, 48], sizes = [16, 8], strides = [1, 1]} : vector<16x96xbf16> to vector<16x8xbf16>
    %94 = vector.extract_strided_slice %57 {offsets = [0, 80], sizes = [16, 8], strides = [1, 1]} : vector<16x96xbf16> to vector<16x8xbf16>
    %cst_34 = arith.constant dense<0.000000e+00> : vector<16x16xf32>
    %95 = tpu.matmul %92, %93, %cst_34 {dimension_numbers = #tpu.dot_dimension_numbers<[1], [1], [0], [0], [0, 0, 1, 0], [], []>} : vector<16x8xbf16>, vector<16x8xbf16>, vector<16x16xf32> -> vector<16x16xf32>
    %96 = arith.addf %95, %48 : vector<16x16xf32>
    %cst_35 = arith.constant dense<0xFF800000> : vector<16xf32>
    %97 = vector.multi_reduction <maximumf>, %96, %cst_35 [1] : vector<16x16xf32> to vector<16xf32>
    %98 = vector.shape_cast %97 : vector<16xf32> to vector<16x1xf32>
    %99 = vector.broadcast %98 : vector<16x1xf32> to vector<16x16xf32>
    %100 = arith.subf %96, %99 : vector<16x16xf32>
    %101 = math.exp %100 : vector<16x16xf32>
    %cst_36 = arith.constant dense<0.000000e+00> : vector<16xf32>
    %102 = vector.multi_reduction <add>, %101, %cst_36 [1] : vector<16x16xf32> to vector<16xf32>
    %103 = vector.shape_cast %102 : vector<16xf32> to vector<16x1xf32>
    %104 = tpu.reciprocal %103 {approx = true} : vector<16x1xf32> -> vector<16x1xf32>
    %105 = vector.broadcast %104 : vector<16x1xf32> to vector<16x16xf32>
    %106 = arith.mulf %101, %105 : vector<16x16xf32>
    %107 = arith.truncf %106 : vector<16x16xf32> to vector<16x16xbf16>
    %cst_37 = arith.constant dense<0.000000e+00> : vector<16x8xf32>
    %108 = tpu.matmul %107, %94, %cst_37 {dimension_numbers = #tpu.dot_dimension_numbers<[1], [0], [0], [1], [0, 0, 1, 1], [], []>} : vector<16x16xbf16>, vector<16x8xbf16>, vector<16x8xf32> -> vector<16x8xf32>
    %109 = vector.extract_strided_slice %57 {offsets = [0, 24], sizes = [16, 8], strides = [1, 1]} : vector<16x96xbf16> to vector<16x8xbf16>
    %110 = vector.extract_strided_slice %57 {offsets = [0, 56], sizes = [16, 8], strides = [1, 1]} : vector<16x96xbf16> to vector<16x8xbf16>
    %111 = vector.extract_strided_slice %57 {offsets = [0, 88], sizes = [16, 8], strides = [1, 1]} : vector<16x96xbf16> to vector<16x8xbf16>
    %cst_38 = arith.constant dense<0.000000e+00> : vector<16x16xf32>
    %112 = tpu.matmul %109, %110, %cst_38 {dimension_numbers = #tpu.dot_dimension_numbers<[1], [1], [0], [0], [0, 0, 1, 0], [], []>} : vector<16x8xbf16>, vector<16x8xbf16>, vector<16x16xf32> -> vector<16x16xf32>
    %113 = arith.addf %112, %48 : vector<16x16xf32>
    %cst_39 = arith.constant dense<0xFF800000> : vector<16xf32>
    %114 = vector.multi_reduction <maximumf>, %113, %cst_39 [1] : vector<16x16xf32> to vector<16xf32>
    %115 = vector.shape_cast %114 : vector<16xf32> to vector<16x1xf32>
    %116 = vector.broadcast %115 : vector<16x1xf32> to vector<16x16xf32>
    %117 = arith.subf %113, %116 : vector<16x16xf32>
    %118 = math.exp %117 : vector<16x16xf32>
    %cst_40 = arith.constant dense<0.000000e+00> : vector<16xf32>
    %119 = vector.multi_reduction <add>, %118, %cst_40 [1] : vector<16x16xf32> to vector<16xf32>
    %120 = vector.shape_cast %119 : vector<16xf32> to vector<16x1xf32>
    %121 = tpu.reciprocal %120 {approx = true} : vector<16x1xf32> -> vector<16x1xf32>
    %122 = vector.broadcast %121 : vector<16x1xf32> to vector<16x16xf32>
    %123 = arith.mulf %118, %122 : vector<16x16xf32>
    %124 = arith.truncf %123 : vector<16x16xf32> to vector<16x16xbf16>
    %cst_41 = arith.constant dense<0.000000e+00> : vector<16x8xf32>
    %125 = tpu.matmul %124, %111, %cst_41 {dimension_numbers = #tpu.dot_dimension_numbers<[1], [0], [0], [1], [0, 0, 1, 1], [], []>} : vector<16x16xbf16>, vector<16x8xbf16>, vector<16x8xf32> -> vector<16x8xf32>
    %126 = tpu.concatenate %74, %91, %108, %125 in 1 : vector<16x8xf32>, vector<16x8xf32>, vector<16x8xf32>, vector<16x8xf32> -> vector<16x32xf32>
    %127 = arith.truncf %126 : vector<16x32xf32> to vector<16x32xbf16>
    %c0_42 = arith.constant 0 : index
    %c0_43 = arith.constant 0 : index
    %c0_44 = arith.constant 0 : index
    %128 = vector.load %arg8[%c0_42, %c0_43, %c0_44] : memref<2x32x32xbf16, #tpu.memory_space<vmem>>, vector<1x32x32xbf16>
    %129 = vector.shape_cast %128 : vector<1x32x32xbf16> to vector<32x32xbf16>
    %cst_45 = arith.constant dense<0.000000e+00> : vector<16x32xf32>
    %130 = tpu.matmul %127, %129, %cst_45 {dimension_numbers = #tpu.dot_dimension_numbers<[1], [0], [0], [1], [0, 0, 1, 1], [], []>} : vector<16x32xbf16>, vector<32x32xbf16>, vector<16x32xf32> -> vector<16x32xf32>
    %c0_46 = arith.constant 0 : index
    %c0_47 = arith.constant 0 : index
    %c0_48 = arith.constant 0 : index
    %131 = vector.load %arg9[%c0_46, %c0_47, %c0_48] : memref<2x1x32xf32, #tpu.memory_space<vmem>>, vector<1x1x32xf32>
    %132 = vector.shape_cast %131 : vector<1x1x32xf32> to vector<1x32xf32>
    %133 = vector.broadcast %132 : vector<1x32xf32> to vector<16x32xf32>
    %134 = arith.addf %130, %133 : vector<16x32xf32>
    %135 = arith.addf %33, %134 : vector<16x32xf32>
    %c0_49 = arith.constant 0 : index
    %c0_50 = arith.constant 0 : index
    %c0_51 = arith.constant 0 : index
    %136 = vector.load %arg10[%c0_49, %c0_50, %c0_51] : memref<2x1x32xf32, #tpu.memory_space<vmem>>, vector<1x1x32xf32>
    %137 = vector.shape_cast %136 : vector<1x1x32xf32> to vector<1x32xf32>
    %c0_52 = arith.constant 0 : index
    %c0_53 = arith.constant 0 : index
    %c0_54 = arith.constant 0 : index
    %138 = vector.load %arg11[%c0_52, %c0_53, %c0_54] : memref<2x1x32xf32, #tpu.memory_space<vmem>>, vector<1x1x32xf32>
    %139 = vector.shape_cast %138 : vector<1x1x32xf32> to vector<1x32xf32>
    %cst_55 = arith.constant dense<0.000000e+00> : vector<16xf32>
    %140 = vector.multi_reduction <add>, %135, %cst_55 [1] : vector<16x32xf32> to vector<16xf32>
    %141 = vector.shape_cast %140 : vector<16xf32> to vector<16x1xf32>
    %cst_56 = arith.constant 3.200000e+01 : f32
    %142 = vector.broadcast %cst_56 : f32 to vector<16x1xf32>
    %143 = arith.divf %141, %142 : vector<16x1xf32>
    %144 = vector.broadcast %143 : vector<16x1xf32> to vector<16x32xf32>
    %145 = arith.subf %135, %144 : vector<16x32xf32>
    %146 = arith.mulf %145, %145 : vector<16x32xf32>
    %cst_57 = arith.constant dense<0.000000e+00> : vector<16xf32>
    %147 = vector.multi_reduction <add>, %146, %cst_57 [1] : vector<16x32xf32> to vector<16xf32>
    %148 = vector.shape_cast %147 : vector<16xf32> to vector<16x1xf32>
    %cst_58 = arith.constant 3.200000e+01 : f32
    %149 = vector.broadcast %cst_58 : f32 to vector<16x1xf32>
    %150 = arith.divf %148, %149 : vector<16x1xf32>
    %151 = vector.broadcast %143 : vector<16x1xf32> to vector<16x32xf32>
    %152 = arith.subf %135, %151 : vector<16x32xf32>
    %cst_59 = arith.constant 9.99999996E-13 : f32
    %153 = vector.broadcast %cst_59 : f32 to vector<16x1xf32>
    %154 = arith.addf %150, %153 : vector<16x1xf32>
    %155 = math.rsqrt %154 : vector<16x1xf32>
    %156 = vector.broadcast %155 : vector<16x1xf32> to vector<16x32xf32>
    %157 = arith.mulf %152, %156 : vector<16x32xf32>
    %158 = vector.broadcast %137 : vector<1x32xf32> to vector<16x32xf32>
    %159 = arith.mulf %157, %158 : vector<16x32xf32>
    %160 = vector.broadcast %139 : vector<1x32xf32> to vector<16x32xf32>
    %161 = arith.addf %159, %160 : vector<16x32xf32>
    %162 = arith.truncf %161 : vector<16x32xf32> to vector<16x32xbf16>
    %c0_60 = arith.constant 0 : index
    %c0_61 = arith.constant 0 : index
    %c0_62 = arith.constant 0 : index
    %163 = vector.load %arg12[%c0_60, %c0_61, %c0_62] : memref<2x32x128xbf16, #tpu.memory_space<vmem>>, vector<1x32x128xbf16>
    %164 = vector.shape_cast %163 : vector<1x32x128xbf16> to vector<32x128xbf16>
    %cst_63 = arith.constant dense<0.000000e+00> : vector<16x128xf32>
    %165 = tpu.matmul %162, %164, %cst_63 {dimension_numbers = #tpu.dot_dimension_numbers<[1], [0], [0], [1], [0, 0, 1, 1], [], []>} : vector<16x32xbf16>, vector<32x128xbf16>, vector<16x128xf32> -> vector<16x128xf32>
    %c0_64 = arith.constant 0 : index
    %c0_65 = arith.constant 0 : index
    %c0_66 = arith.constant 0 : index
    %166 = vector.load %arg13[%c0_64, %c0_65, %c0_66] : memref<2x1x128xf32, #tpu.memory_space<vmem>>, vector<1x1x128xf32>
    %167 = vector.shape_cast %166 : vector<1x1x128xf32> to vector<1x128xf32>
    %168 = vector.broadcast %167 : vector<1x128xf32> to vector<16x128xf32>
    %169 = arith.addf %165, %168 : vector<16x128xf32>
    %cst_67 = arith.constant 5.000000e-01 : f32
    %170 = vector.broadcast %cst_67 : f32 to vector<16x128xf32>
    %171 = arith.mulf %170, %169 : vector<16x128xf32>
    %cst_68 = arith.constant 4.471500e-02 : f32
    %172 = vector.broadcast %cst_68 : f32 to vector<16x128xf32>
    %173 = arith.mulf %172, %169 : vector<16x128xf32>
    %174 = arith.mulf %173, %169 : vector<16x128xf32>
    %175 = arith.mulf %174, %169 : vector<16x128xf32>
    %176 = arith.addf %169, %175 : vector<16x128xf32>
    %cst_69 = arith.constant 0.797884583 : f32
    %177 = vector.broadcast %cst_69 : f32 to vector<16x128xf32>
    %178 = arith.mulf %177, %176 : vector<16x128xf32>
    %179 = math.tanh %178 : vector<16x128xf32>
    %cst_70 = arith.constant 1.000000e+00 : f32
    %180 = vector.broadcast %cst_70 : f32 to vector<16x128xf32>
    %181 = arith.addf %180, %179 : vector<16x128xf32>
    %182 = arith.mulf %171, %181 : vector<16x128xf32>
    %183 = arith.truncf %182 : vector<16x128xf32> to vector<16x128xbf16>
    %c0_71 = arith.constant 0 : index
    %c0_72 = arith.constant 0 : index
    %c0_73 = arith.constant 0 : index
    %184 = vector.load %arg14[%c0_71, %c0_72, %c0_73] : memref<2x128x32xbf16, #tpu.memory_space<vmem>>, vector<1x128x32xbf16>
    %185 = vector.shape_cast %184 : vector<1x128x32xbf16> to vector<128x32xbf16>
    %cst_74 = arith.constant dense<0.000000e+00> : vector<16x32xf32>
    %186 = tpu.matmul %183, %185, %cst_74 {dimension_numbers = #tpu.dot_dimension_numbers<[1], [0], [0], [1], [0, 0, 1, 1], [], []>} : vector<16x128xbf16>, vector<128x32xbf16>, vector<16x32xf32> -> vector<16x32xf32>
    %c0_75 = arith.constant 0 : index
    %c0_76 = arith.constant 0 : index
    %c0_77 = arith.constant 0 : index
    %187 = vector.load %arg15[%c0_75, %c0_76, %c0_77] : memref<2x1x32xf32, #tpu.memory_space<vmem>>, vector<1x1x32xf32>
    %188 = vector.shape_cast %187 : vector<1x1x32xf32> to vector<1x32xf32>
    %189 = vector.broadcast %188 : vector<1x32xf32> to vector<16x32xf32>
    %190 = arith.addf %186, %189 : vector<16x32xf32>
    %191 = arith.addf %161, %190 : vector<16x32xf32>
    %c0_78 = arith.constant 0 : index
    %c0_79 = arith.constant 0 : index
    %c0_80 = arith.constant 0 : index
    %192 = vector.load %arg16[%c0_78, %c0_79, %c0_80] : memref<2x1x32xf32, #tpu.memory_space<vmem>>, vector<1x1x32xf32>
    %193 = vector.shape_cast %192 : vector<1x1x32xf32> to vector<1x32xf32>
    %c0_81 = arith.constant 0 : index
    %c0_82 = arith.constant 0 : index
    %c0_83 = arith.constant 0 : index
    %194 = vector.load %arg17[%c0_81, %c0_82, %c0_83] : memref<2x1x32xf32, #tpu.memory_space<vmem>>, vector<1x1x32xf32>
    %195 = vector.shape_cast %194 : vector<1x1x32xf32> to vector<1x32xf32>
    %cst_84 = arith.constant dense<0.000000e+00> : vector<16xf32>
    %196 = vector.multi_reduction <add>, %191, %cst_84 [1] : vector<16x32xf32> to vector<16xf32>
    %197 = vector.shape_cast %196 : vector<16xf32> to vector<16x1xf32>
    %cst_85 = arith.constant 3.200000e+01 : f32
    %198 = vector.broadcast %cst_85 : f32 to vector<16x1xf32>
    %199 = arith.divf %197, %198 : vector<16x1xf32>
    %200 = vector.broadcast %199 : vector<16x1xf32> to vector<16x32xf32>
    %201 = arith.subf %191, %200 : vector<16x32xf32>
    %202 = arith.mulf %201, %201 : vector<16x32xf32>
    %cst_86 = arith.constant dense<0.000000e+00> : vector<16xf32>
    %203 = vector.multi_reduction <add>, %202, %cst_86 [1] : vector<16x32xf32> to vector<16xf32>
    %204 = vector.shape_cast %203 : vector<16xf32> to vector<16x1xf32>
    %cst_87 = arith.constant 3.200000e+01 : f32
    %205 = vector.broadcast %cst_87 : f32 to vector<16x1xf32>
    %206 = arith.divf %204, %205 : vector<16x1xf32>
    %207 = vector.broadcast %199 : vector<16x1xf32> to vector<16x32xf32>
    %208 = arith.subf %191, %207 : vector<16x32xf32>
    %cst_88 = arith.constant 9.99999996E-13 : f32
    %209 = vector.broadcast %cst_88 : f32 to vector<16x1xf32>
    %210 = arith.addf %206, %209 : vector<16x1xf32>
    %211 = math.rsqrt %210 : vector<16x1xf32>
    %212 = vector.broadcast %211 : vector<16x1xf32> to vector<16x32xf32>
    %213 = arith.mulf %208, %212 : vector<16x32xf32>
    %214 = vector.broadcast %193 : vector<1x32xf32> to vector<16x32xf32>
    %215 = arith.mulf %213, %214 : vector<16x32xf32>
    %216 = vector.broadcast %195 : vector<1x32xf32> to vector<16x32xf32>
    %217 = arith.addf %215, %216 : vector<16x32xf32>
    %218 = arith.truncf %217 : vector<16x32xf32> to vector<16x32xbf16>
    %c1 = arith.constant 1 : index
    %c0_89 = arith.constant 0 : index
    %c0_90 = arith.constant 0 : index
    %219 = vector.load %arg6[%c1, %c0_89, %c0_90] : memref<2x32x96xbf16, #tpu.memory_space<vmem>>, vector<1x32x96xbf16>
    %220 = vector.shape_cast %219 : vector<1x32x96xbf16> to vector<32x96xbf16>
    %cst_91 = arith.constant dense<0.000000e+00> : vector<16x96xf32>
    %221 = tpu.matmul %218, %220, %cst_91 {dimension_numbers = #tpu.dot_dimension_numbers<[1], [0], [0], [1], [0, 0, 1, 1], [], []>} : vector<16x32xbf16>, vector<32x96xbf16>, vector<16x96xf32> -> vector<16x96xf32>
    %c1_92 = arith.constant 1 : index
    %c0_93 = arith.constant 0 : index
    %c0_94 = arith.constant 0 : index
    %222 = vector.load %arg7[%c1_92, %c0_93, %c0_94] : memref<2x1x96xf32, #tpu.memory_space<vmem>>, vector<1x1x96xf32>
    %223 = vector.shape_cast %222 : vector<1x1x96xf32> to vector<1x96xf32>
    %224 = vector.broadcast %223 : vector<1x96xf32> to vector<16x96xf32>
    %225 = arith.addf %221, %224 : vector<16x96xf32>
    %226 = arith.truncf %225 : vector<16x96xf32> to vector<16x96xbf16>
    %227 = vector.extract_strided_slice %226 {offsets = [0, 0], sizes = [16, 8], strides = [1, 1]} : vector<16x96xbf16> to vector<16x8xbf16>
    %228 = vector.extract_strided_slice %226 {offsets = [0, 32], sizes = [16, 8], strides = [1, 1]} : vector<16x96xbf16> to vector<16x8xbf16>
    %229 = vector.extract_strided_slice %226 {offsets = [0, 64], sizes = [16, 8], strides = [1, 1]} : vector<16x96xbf16> to vector<16x8xbf16>
    %cst_95 = arith.constant dense<0.000000e+00> : vector<16x16xf32>
    %230 = tpu.matmul %227, %228, %cst_95 {dimension_numbers = #tpu.dot_dimension_numbers<[1], [1], [0], [0], [0, 0, 1, 0], [], []>} : vector<16x8xbf16>, vector<16x8xbf16>, vector<16x16xf32> -> vector<16x16xf32>
    %231 = arith.addf %230, %48 : vector<16x16xf32>
    %cst_96 = arith.constant dense<0xFF800000> : vector<16xf32>
    %232 = vector.multi_reduction <maximumf>, %231, %cst_96 [1] : vector<16x16xf32> to vector<16xf32>
    %233 = vector.shape_cast %232 : vector<16xf32> to vector<16x1xf32>
    %234 = vector.broadcast %233 : vector<16x1xf32> to vector<16x16xf32>
    %235 = arith.subf %231, %234 : vector<16x16xf32>
    %236 = math.exp %235 : vector<16x16xf32>
    %cst_97 = arith.constant dense<0.000000e+00> : vector<16xf32>
    %237 = vector.multi_reduction <add>, %236, %cst_97 [1] : vector<16x16xf32> to vector<16xf32>
    %238 = vector.shape_cast %237 : vector<16xf32> to vector<16x1xf32>
    %239 = tpu.reciprocal %238 {approx = true} : vector<16x1xf32> -> vector<16x1xf32>
    %240 = vector.broadcast %239 : vector<16x1xf32> to vector<16x16xf32>
    %241 = arith.mulf %236, %240 : vector<16x16xf32>
    %242 = arith.truncf %241 : vector<16x16xf32> to vector<16x16xbf16>
    %cst_98 = arith.constant dense<0.000000e+00> : vector<16x8xf32>
    %243 = tpu.matmul %242, %229, %cst_98 {dimension_numbers = #tpu.dot_dimension_numbers<[1], [0], [0], [1], [0, 0, 1, 1], [], []>} : vector<16x16xbf16>, vector<16x8xbf16>, vector<16x8xf32> -> vector<16x8xf32>
    %244 = vector.extract_strided_slice %226 {offsets = [0, 8], sizes = [16, 8], strides = [1, 1]} : vector<16x96xbf16> to vector<16x8xbf16>
    %245 = vector.extract_strided_slice %226 {offsets = [0, 40], sizes = [16, 8], strides = [1, 1]} : vector<16x96xbf16> to vector<16x8xbf16>
    %246 = vector.extract_strided_slice %226 {offsets = [0, 72], sizes = [16, 8], strides = [1, 1]} : vector<16x96xbf16> to vector<16x8xbf16>
    %cst_99 = arith.constant dense<0.000000e+00> : vector<16x16xf32>
    %247 = tpu.matmul %244, %245, %cst_99 {dimension_numbers = #tpu.dot_dimension_numbers<[1], [1], [0], [0], [0, 0, 1, 0], [], []>} : vector<16x8xbf16>, vector<16x8xbf16>, vector<16x16xf32> -> vector<16x16xf32>
    %248 = arith.addf %247, %48 : vector<16x16xf32>
    %cst_100 = arith.constant dense<0xFF800000> : vector<16xf32>
    %249 = vector.multi_reduction <maximumf>, %248, %cst_100 [1] : vector<16x16xf32> to vector<16xf32>
    %250 = vector.shape_cast %249 : vector<16xf32> to vector<16x1xf32>
    %251 = vector.broadcast %250 : vector<16x1xf32> to vector<16x16xf32>
    %252 = arith.subf %248, %251 : vector<16x16xf32>
    %253 = math.exp %252 : vector<16x16xf32>
    %cst_101 = arith.constant dense<0.000000e+00> : vector<16xf32>
    %254 = vector.multi_reduction <add>, %253, %cst_101 [1] : vector<16x16xf32> to vector<16xf32>
    %255 = vector.shape_cast %254 : vector<16xf32> to vector<16x1xf32>
    %256 = tpu.reciprocal %255 {approx = true} : vector<16x1xf32> -> vector<16x1xf32>
    %257 = vector.broadcast %256 : vector<16x1xf32> to vector<16x16xf32>
    %258 = arith.mulf %253, %257 : vector<16x16xf32>
    %259 = arith.truncf %258 : vector<16x16xf32> to vector<16x16xbf16>
    %cst_102 = arith.constant dense<0.000000e+00> : vector<16x8xf32>
    %260 = tpu.matmul %259, %246, %cst_102 {dimension_numbers = #tpu.dot_dimension_numbers<[1], [0], [0], [1], [0, 0, 1, 1], [], []>} : vector<16x16xbf16>, vector<16x8xbf16>, vector<16x8xf32> -> vector<16x8xf32>
    %261 = vector.extract_strided_slice %226 {offsets = [0, 16], sizes = [16, 8], strides = [1, 1]} : vector<16x96xbf16> to vector<16x8xbf16>
    %262 = vector.extract_strided_slice %226 {offsets = [0, 48], sizes = [16, 8], strides = [1, 1]} : vector<16x96xbf16> to vector<16x8xbf16>
    %263 = vector.extract_strided_slice %226 {offsets = [0, 80], sizes = [16, 8], strides = [1, 1]} : vector<16x96xbf16> to vector<16x8xbf16>
    %cst_103 = arith.constant dense<0.000000e+00> : vector<16x16xf32>
    %264 = tpu.matmul %261, %262, %cst_103 {dimension_numbers = #tpu.dot_dimension_numbers<[1], [1], [0], [0], [0, 0, 1, 0], [], []>} : vector<16x8xbf16>, vector<16x8xbf16>, vector<16x16xf32> -> vector<16x16xf32>
    %265 = arith.addf %264, %48 : vector<16x16xf32>
    %cst_104 = arith.constant dense<0xFF800000> : vector<16xf32>
    %266 = vector.multi_reduction <maximumf>, %265, %cst_104 [1] : vector<16x16xf32> to vector<16xf32>
    %267 = vector.shape_cast %266 : vector<16xf32> to vector<16x1xf32>
    %268 = vector.broadcast %267 : vector<16x1xf32> to vector<16x16xf32>
    %269 = arith.subf %265, %268 : vector<16x16xf32>
    %270 = math.exp %269 : vector<16x16xf32>
    %cst_105 = arith.constant dense<0.000000e+00> : vector<16xf32>
    %271 = vector.multi_reduction <add>, %270, %cst_105 [1] : vector<16x16xf32> to vector<16xf32>
    %272 = vector.shape_cast %271 : vector<16xf32> to vector<16x1xf32>
    %273 = tpu.reciprocal %272 {approx = true} : vector<16x1xf32> -> vector<16x1xf32>
    %274 = vector.broadcast %273 : vector<16x1xf32> to vector<16x16xf32>
    %275 = arith.mulf %270, %274 : vector<16x16xf32>
    %276 = arith.truncf %275 : vector<16x16xf32> to vector<16x16xbf16>
    %cst_106 = arith.constant dense<0.000000e+00> : vector<16x8xf32>
    %277 = tpu.matmul %276, %263, %cst_106 {dimension_numbers = #tpu.dot_dimension_numbers<[1], [0], [0], [1], [0, 0, 1, 1], [], []>} : vector<16x16xbf16>, vector<16x8xbf16>, vector<16x8xf32> -> vector<16x8xf32>
    %278 = vector.extract_strided_slice %226 {offsets = [0, 24], sizes = [16, 8], strides = [1, 1]} : vector<16x96xbf16> to vector<16x8xbf16>
    %279 = vector.extract_strided_slice %226 {offsets = [0, 56], sizes = [16, 8], strides = [1, 1]} : vector<16x96xbf16> to vector<16x8xbf16>
    %280 = vector.extract_strided_slice %226 {offsets = [0, 88], sizes = [16, 8], strides = [1, 1]} : vector<16x96xbf16> to vector<16x8xbf16>
    %cst_107 = arith.constant dense<0.000000e+00> : vector<16x16xf32>
    %281 = tpu.matmul %278, %279, %cst_107 {dimension_numbers = #tpu.dot_dimension_numbers<[1], [1], [0], [0], [0, 0, 1, 0], [], []>} : vector<16x8xbf16>, vector<16x8xbf16>, vector<16x16xf32> -> vector<16x16xf32>
    %282 = arith.addf %281, %48 : vector<16x16xf32>
    %cst_108 = arith.constant dense<0xFF800000> : vector<16xf32>
    %283 = vector.multi_reduction <maximumf>, %282, %cst_108 [1] : vector<16x16xf32> to vector<16xf32>
    %284 = vector.shape_cast %283 : vector<16xf32> to vector<16x1xf32>
    %285 = vector.broadcast %284 : vector<16x1xf32> to vector<16x16xf32>
    %286 = arith.subf %282, %285 : vector<16x16xf32>
    %287 = math.exp %286 : vector<16x16xf32>
    %cst_109 = arith.constant dense<0.000000e+00> : vector<16xf32>
    %288 = vector.multi_reduction <add>, %287, %cst_109 [1] : vector<16x16xf32> to vector<16xf32>
    %289 = vector.shape_cast %288 : vector<16xf32> to vector<16x1xf32>
    %290 = tpu.reciprocal %289 {approx = true} : vector<16x1xf32> -> vector<16x1xf32>
    %291 = vector.broadcast %290 : vector<16x1xf32> to vector<16x16xf32>
    %292 = arith.mulf %287, %291 : vector<16x16xf32>
    %293 = arith.truncf %292 : vector<16x16xf32> to vector<16x16xbf16>
    %cst_110 = arith.constant dense<0.000000e+00> : vector<16x8xf32>
    %294 = tpu.matmul %293, %280, %cst_110 {dimension_numbers = #tpu.dot_dimension_numbers<[1], [0], [0], [1], [0, 0, 1, 1], [], []>} : vector<16x16xbf16>, vector<16x8xbf16>, vector<16x8xf32> -> vector<16x8xf32>
    %295 = tpu.concatenate %243, %260, %277, %294 in 1 : vector<16x8xf32>, vector<16x8xf32>, vector<16x8xf32>, vector<16x8xf32> -> vector<16x32xf32>
    %296 = arith.truncf %295 : vector<16x32xf32> to vector<16x32xbf16>
    %c1_111 = arith.constant 1 : index
    %c0_112 = arith.constant 0 : index
    %c0_113 = arith.constant 0 : index
    %297 = vector.load %arg8[%c1_111, %c0_112, %c0_113] : memref<2x32x32xbf16, #tpu.memory_space<vmem>>, vector<1x32x32xbf16>
    %298 = vector.shape_cast %297 : vector<1x32x32xbf16> to vector<32x32xbf16>
    %cst_114 = arith.constant dense<0.000000e+00> : vector<16x32xf32>
    %299 = tpu.matmul %296, %298, %cst_114 {dimension_numbers = #tpu.dot_dimension_numbers<[1], [0], [0], [1], [0, 0, 1, 1], [], []>} : vector<16x32xbf16>, vector<32x32xbf16>, vector<16x32xf32> -> vector<16x32xf32>
    %c1_115 = arith.constant 1 : index
    %c0_116 = arith.constant 0 : index
    %c0_117 = arith.constant 0 : index
    %300 = vector.load %arg9[%c1_115, %c0_116, %c0_117] : memref<2x1x32xf32, #tpu.memory_space<vmem>>, vector<1x1x32xf32>
    %301 = vector.shape_cast %300 : vector<1x1x32xf32> to vector<1x32xf32>
    %302 = vector.broadcast %301 : vector<1x32xf32> to vector<16x32xf32>
    %303 = arith.addf %299, %302 : vector<16x32xf32>
    %304 = arith.addf %217, %303 : vector<16x32xf32>
    %c1_118 = arith.constant 1 : index
    %c0_119 = arith.constant 0 : index
    %c0_120 = arith.constant 0 : index
    %305 = vector.load %arg10[%c1_118, %c0_119, %c0_120] : memref<2x1x32xf32, #tpu.memory_space<vmem>>, vector<1x1x32xf32>
    %306 = vector.shape_cast %305 : vector<1x1x32xf32> to vector<1x32xf32>
    %c1_121 = arith.constant 1 : index
    %c0_122 = arith.constant 0 : index
    %c0_123 = arith.constant 0 : index
    %307 = vector.load %arg11[%c1_121, %c0_122, %c0_123] : memref<2x1x32xf32, #tpu.memory_space<vmem>>, vector<1x1x32xf32>
    %308 = vector.shape_cast %307 : vector<1x1x32xf32> to vector<1x32xf32>
    %cst_124 = arith.constant dense<0.000000e+00> : vector<16xf32>
    %309 = vector.multi_reduction <add>, %304, %cst_124 [1] : vector<16x32xf32> to vector<16xf32>
    %310 = vector.shape_cast %309 : vector<16xf32> to vector<16x1xf32>
    %cst_125 = arith.constant 3.200000e+01 : f32
    %311 = vector.broadcast %cst_125 : f32 to vector<16x1xf32>
    %312 = arith.divf %310, %311 : vector<16x1xf32>
    %313 = vector.broadcast %312 : vector<16x1xf32> to vector<16x32xf32>
    %314 = arith.subf %304, %313 : vector<16x32xf32>
    %315 = arith.mulf %314, %314 : vector<16x32xf32>
    %cst_126 = arith.constant dense<0.000000e+00> : vector<16xf32>
    %316 = vector.multi_reduction <add>, %315, %cst_126 [1] : vector<16x32xf32> to vector<16xf32>
    %317 = vector.shape_cast %316 : vector<16xf32> to vector<16x1xf32>
    %cst_127 = arith.constant 3.200000e+01 : f32
    %318 = vector.broadcast %cst_127 : f32 to vector<16x1xf32>
    %319 = arith.divf %317, %318 : vector<16x1xf32>
    %320 = vector.broadcast %312 : vector<16x1xf32> to vector<16x32xf32>
    %321 = arith.subf %304, %320 : vector<16x32xf32>
    %cst_128 = arith.constant 9.99999996E-13 : f32
    %322 = vector.broadcast %cst_128 : f32 to vector<16x1xf32>
    %323 = arith.addf %319, %322 : vector<16x1xf32>
    %324 = math.rsqrt %323 : vector<16x1xf32>
    %325 = vector.broadcast %324 : vector<16x1xf32> to vector<16x32xf32>
    %326 = arith.mulf %321, %325 : vector<16x32xf32>
    %327 = vector.broadcast %306 : vector<1x32xf32> to vector<16x32xf32>
    %328 = arith.mulf %326, %327 : vector<16x32xf32>
    %329 = vector.broadcast %308 : vector<1x32xf32> to vector<16x32xf32>
    %330 = arith.addf %328, %329 : vector<16x32xf32>
    %331 = arith.truncf %330 : vector<16x32xf32> to vector<16x32xbf16>
    %c1_129 = arith.constant 1 : index
    %c0_130 = arith.constant 0 : index
    %c0_131 = arith.constant 0 : index
    %332 = vector.load %arg12[%c1_129, %c0_130, %c0_131] : memref<2x32x128xbf16, #tpu.memory_space<vmem>>, vector<1x32x128xbf16>
    %333 = vector.shape_cast %332 : vector<1x32x128xbf16> to vector<32x128xbf16>
    %cst_132 = arith.constant dense<0.000000e+00> : vector<16x128xf32>
    %334 = tpu.matmul %331, %333, %cst_132 {dimension_numbers = #tpu.dot_dimension_numbers<[1], [0], [0], [1], [0, 0, 1, 1], [], []>} : vector<16x32xbf16>, vector<32x128xbf16>, vector<16x128xf32> -> vector<16x128xf32>
    %c1_133 = arith.constant 1 : index
    %c0_134 = arith.constant 0 : index
    %c0_135 = arith.constant 0 : index
    %335 = vector.load %arg13[%c1_133, %c0_134, %c0_135] : memref<2x1x128xf32, #tpu.memory_space<vmem>>, vector<1x1x128xf32>
    %336 = vector.shape_cast %335 : vector<1x1x128xf32> to vector<1x128xf32>
    %337 = vector.broadcast %336 : vector<1x128xf32> to vector<16x128xf32>
    %338 = arith.addf %334, %337 : vector<16x128xf32>
    %cst_136 = arith.constant 5.000000e-01 : f32
    %339 = vector.broadcast %cst_136 : f32 to vector<16x128xf32>
    %340 = arith.mulf %339, %338 : vector<16x128xf32>
    %cst_137 = arith.constant 4.471500e-02 : f32
    %341 = vector.broadcast %cst_137 : f32 to vector<16x128xf32>
    %342 = arith.mulf %341, %338 : vector<16x128xf32>
    %343 = arith.mulf %342, %338 : vector<16x128xf32>
    %344 = arith.mulf %343, %338 : vector<16x128xf32>
    %345 = arith.addf %338, %344 : vector<16x128xf32>
    %cst_138 = arith.constant 0.797884583 : f32
    %346 = vector.broadcast %cst_138 : f32 to vector<16x128xf32>
    %347 = arith.mulf %346, %345 : vector<16x128xf32>
    %348 = math.tanh %347 : vector<16x128xf32>
    %cst_139 = arith.constant 1.000000e+00 : f32
    %349 = vector.broadcast %cst_139 : f32 to vector<16x128xf32>
    %350 = arith.addf %349, %348 : vector<16x128xf32>
    %351 = arith.mulf %340, %350 : vector<16x128xf32>
    %352 = arith.truncf %351 : vector<16x128xf32> to vector<16x128xbf16>
    %c1_140 = arith.constant 1 : index
    %c0_141 = arith.constant 0 : index
    %c0_142 = arith.constant 0 : index
    %353 = vector.load %arg14[%c1_140, %c0_141, %c0_142] : memref<2x128x32xbf16, #tpu.memory_space<vmem>>, vector<1x128x32xbf16>
    %354 = vector.shape_cast %353 : vector<1x128x32xbf16> to vector<128x32xbf16>
    %cst_143 = arith.constant dense<0.000000e+00> : vector<16x32xf32>
    %355 = tpu.matmul %352, %354, %cst_143 {dimension_numbers = #tpu.dot_dimension_numbers<[1], [0], [0], [1], [0, 0, 1, 1], [], []>} : vector<16x128xbf16>, vector<128x32xbf16>, vector<16x32xf32> -> vector<16x32xf32>
    %c1_144 = arith.constant 1 : index
    %c0_145 = arith.constant 0 : index
    %c0_146 = arith.constant 0 : index
    %356 = vector.load %arg15[%c1_144, %c0_145, %c0_146] : memref<2x1x32xf32, #tpu.memory_space<vmem>>, vector<1x1x32xf32>
    %357 = vector.shape_cast %356 : vector<1x1x32xf32> to vector<1x32xf32>
    %358 = vector.broadcast %357 : vector<1x32xf32> to vector<16x32xf32>
    %359 = arith.addf %355, %358 : vector<16x32xf32>
    %360 = arith.addf %330, %359 : vector<16x32xf32>
    %c1_147 = arith.constant 1 : index
    %c0_148 = arith.constant 0 : index
    %c0_149 = arith.constant 0 : index
    %361 = vector.load %arg16[%c1_147, %c0_148, %c0_149] : memref<2x1x32xf32, #tpu.memory_space<vmem>>, vector<1x1x32xf32>
    %362 = vector.shape_cast %361 : vector<1x1x32xf32> to vector<1x32xf32>
    %c1_150 = arith.constant 1 : index
    %c0_151 = arith.constant 0 : index
    %c0_152 = arith.constant 0 : index
    %363 = vector.load %arg17[%c1_150, %c0_151, %c0_152] : memref<2x1x32xf32, #tpu.memory_space<vmem>>, vector<1x1x32xf32>
    %364 = vector.shape_cast %363 : vector<1x1x32xf32> to vector<1x32xf32>
    %cst_153 = arith.constant dense<0.000000e+00> : vector<16xf32>
    %365 = vector.multi_reduction <add>, %360, %cst_153 [1] : vector<16x32xf32> to vector<16xf32>
    %366 = vector.shape_cast %365 : vector<16xf32> to vector<16x1xf32>
    %cst_154 = arith.constant 3.200000e+01 : f32
    %367 = vector.broadcast %cst_154 : f32 to vector<16x1xf32>
    %368 = arith.divf %366, %367 : vector<16x1xf32>
    %369 = vector.broadcast %368 : vector<16x1xf32> to vector<16x32xf32>
    %370 = arith.subf %360, %369 : vector<16x32xf32>
    %371 = arith.mulf %370, %370 : vector<16x32xf32>
    %cst_155 = arith.constant dense<0.000000e+00> : vector<16xf32>
    %372 = vector.multi_reduction <add>, %371, %cst_155 [1] : vector<16x32xf32> to vector<16xf32>
    %373 = vector.shape_cast %372 : vector<16xf32> to vector<16x1xf32>
    %cst_156 = arith.constant 3.200000e+01 : f32
    %374 = vector.broadcast %cst_156 : f32 to vector<16x1xf32>
    %375 = arith.divf %373, %374 : vector<16x1xf32>
    %376 = vector.broadcast %368 : vector<16x1xf32> to vector<16x32xf32>
    %377 = arith.subf %360, %376 : vector<16x32xf32>
    %cst_157 = arith.constant 9.99999996E-13 : f32
    %378 = vector.broadcast %cst_157 : f32 to vector<16x1xf32>
    %379 = arith.addf %375, %378 : vector<16x1xf32>
    %380 = math.rsqrt %379 : vector<16x1xf32>
    %381 = vector.broadcast %380 : vector<16x1xf32> to vector<16x32xf32>
    %382 = arith.mulf %377, %381 : vector<16x32xf32>
    %383 = vector.broadcast %362 : vector<1x32xf32> to vector<16x32xf32>
    %384 = arith.mulf %382, %383 : vector<16x32xf32>
    %385 = vector.broadcast %364 : vector<1x32xf32> to vector<16x32xf32>
    %386 = arith.addf %384, %385 : vector<16x32xf32>
    %387 = vector.extract_strided_slice %386 {offsets = [0, 0], sizes = [1, 32], strides = [1, 1]} : vector<16x32xf32> to vector<1x32xf32>
    %388 = vector.extract_strided_slice %386 {offsets = [8, 0], sizes = [1, 32], strides = [1, 1]} : vector<16x32xf32> to vector<1x32xf32>
    %389 = tpu.concatenate %387, %388 in 0 : vector<1x32xf32>, vector<1x32xf32> -> vector<2x32xf32>
    %390 = arith.truncf %389 : vector<2x32xf32> to vector<2x32xbf16>
    %c0_158 = arith.constant 0 : index
    %c0_159 = arith.constant 0 : index
    %391 = vector.load %arg18[%c0_158, %c0_159] : memref<32x32xbf16, #tpu.memory_space<vmem>>, vector<32x32xbf16>
    %cst_160 = arith.constant dense<0.000000e+00> : vector<2x32xf32>
    %392 = tpu.matmul %390, %391, %cst_160 {dimension_numbers = #tpu.dot_dimension_numbers<[1], [0], [0], [1], [0, 0, 1, 1], [], []>} : vector<2x32xbf16>, vector<32x32xbf16>, vector<2x32xf32> -> vector<2x32xf32>
    %c0_161 = arith.constant 0 : index
    %c0_162 = arith.constant 0 : index
    %393 = vector.load %arg19[%c0_161, %c0_162] : memref<1x32xf32, #tpu.memory_space<vmem>>, vector<1x32xf32>
    %394 = vector.broadcast %393 : vector<1x32xf32> to vector<2x32xf32>
    %395 = arith.addf %392, %394 : vector<2x32xf32>
    %396 = arith.truncf %395 : vector<2x32xf32> to vector<2x32xbf16>
    %c0_163 = arith.constant 0 : index
    %c0_164 = arith.constant 0 : index
    %397 = vector.load %arg20[%c0_163, %c0_164] : memref<32x128xbf16, #tpu.memory_space<vmem>>, vector<32x128xbf16>
    %cst_165 = arith.constant dense<0.000000e+00> : vector<2x128xf32>
    %398 = tpu.matmul %396, %397, %cst_165 {dimension_numbers = #tpu.dot_dimension_numbers<[1], [0], [0], [1], [0, 0, 1, 1], [], []>} : vector<2x32xbf16>, vector<32x128xbf16>, vector<2x128xf32> -> vector<2x128xf32>
    %c0_166 = arith.constant 0 : index
    %c0_167 = arith.constant 0 : index
    %399 = vector.load %arg22[%c0_166, %c0_167] : memref<1x128xf32, #tpu.memory_space<vmem>>, vector<1x128xf32>
    %400 = vector.broadcast %399 : vector<1x128xf32> to vector<2x128xf32>
    %401 = arith.addf %398, %400 : vector<2x128xf32>
    %cst_168 = arith.constant dense<0xFF800000> : vector<2xf32>
    %402 = vector.multi_reduction <maximumf>, %401, %cst_168 [1] : vector<2x128xf32> to vector<2xf32>
    %403 = vector.shape_cast %402 : vector<2xf32> to vector<2x1xf32>
    %404 = vector.broadcast %403 : vector<2x1xf32> to vector<2x128xf32>
    %405 = arith.subf %401, %404 : vector<2x128xf32>
    %406 = math.exp %405 : vector<2x128xf32>
    %cst_169 = arith.constant dense<0.000000e+00> : vector<2xf32>
    %407 = vector.multi_reduction <add>, %406, %cst_169 [1] : vector<2x128xf32> to vector<2xf32>
    %408 = vector.shape_cast %407 : vector<2xf32> to vector<2x1xf32>
    %409 = vector.broadcast %408 : vector<2x1xf32> to vector<2x128xf32>
    %410 = arith.divf %406, %409 : vector<2x128xf32>
    %411 = arith.truncf %410 : vector<2x128xf32> to vector<2x128xbf16>
    %c0_170 = arith.constant 0 : index
    %c0_171 = arith.constant 0 : index
    %412 = vector.load %arg21[%c0_170, %c0_171] : memref<128x32xbf16, #tpu.memory_space<vmem>>, vector<128x32xbf16>
    %cst_172 = arith.constant dense<0.000000e+00> : vector<2x32xf32>
    %413 = tpu.matmul %411, %412, %cst_172 {dimension_numbers = #tpu.dot_dimension_numbers<[1], [0], [0], [1], [0, 0, 1, 1], [], []>} : vector<2x128xbf16>, vector<128x32xbf16>, vector<2x32xf32> -> vector<2x32xf32>
    %414 = arith.addf %395, %413 : vector<2x32xf32>
    %415 = arith.truncf %414 : vector<2x32xf32> to vector<2x32xbf16>
    %c0_173 = arith.constant 0 : index
    %c0_174 = arith.constant 0 : index
    %416 = vector.load %arg23[%c0_173, %c0_174] : memref<32x128xbf16, #tpu.memory_space<vmem>>, vector<32x128xbf16>
    %cst_175 = arith.constant dense<0.000000e+00> : vector<2x128xf32>
    %417 = tpu.matmul %415, %416, %cst_175 {dimension_numbers = #tpu.dot_dimension_numbers<[1], [0], [0], [1], [0, 0, 1, 1], [], []>} : vector<2x32xbf16>, vector<32x128xbf16>, vector<2x128xf32> -> vector<2x128xf32>
    %c0_176 = arith.constant 0 : index
    %c0_177 = arith.constant 0 : index
    %418 = vector.load %arg24[%c0_176, %c0_177] : memref<1x128xf32, #tpu.memory_space<vmem>>, vector<1x128xf32>
    %419 = vector.broadcast %418 : vector<1x128xf32> to vector<2x128xf32>
    %420 = arith.addf %417, %419 : vector<2x128xf32>
    %c0_178 = arith.constant 0 : index
    %c0_179 = arith.constant 0 : index
    %421 = vector.load %arg25[%c0_178, %c0_179] : memref<2x128xf32, #tpu.memory_space<vmem>>, vector<2x128xf32>
    tpu.vector_store %arg25[%c0_178, %c0_179], %420 {strides = array<i32>} : memref<2x128xf32, #tpu.memory_space<vmem>>, vector<2x128xf32>,
    %c0_180 = arith.constant 0 : index
    %c0_181 = arith.constant 0 : index
    %422 = vector.load %arg26[%c0_180, %c0_181] : memref<2x128xf32, #tpu.memory_space<vmem>>, vector<2x128xf32>
    tpu.vector_store %arg26[%c0_180, %c0_181], %410 {strides = array<i32>} : memref<2x128xf32, #tpu.memory_space<vmem>>, vector<2x128xf32>,
    return
  }
}

</mosaic_0001>

<bundles_post_ra>
// kernel: text_recommender_forward.1
= control target key start
LH: loop header
LB: loop body
LE: loop exit
PB: predicated region body
PF: predicated region fallthrough
CT: control target
= control target key end

     0   :  { %s3949_s0 = inlined_call_operand.vmem [shape: s32[16,1], index: 0, kind: input, shape index: {}]   ;;  %s3950_s1 = inlined_call_operand.vmem [shape: s32[1,16], index: 1, kind: input, shape index: {}]   ;;  %s3951_s2 = inlined_call_operand.vmem [shape: f32[50,32], index: 2, kind: input, shape index: {}]   ;;  %s3952_s3 = inlined_call_operand.vmem [shape: f32[16,32], index: 3, kind: input, shape index: {}]   ;;  %s3953_s4 = inlined_call_operand.vmem [shape: f32[1,32], index: 4, kind: input, shape index: {}]   ;;  %s3954_s5 = inlined_call_operand.vmem [shape: f32[1,32], index: 5, kind: input, shape index: {}]   ;;  %s3955_s6 = inlined_call_operand.vmem [shape: bf16[2,32,96], index: 6, kind: input, shape index: {}]   ;;  %s3956_s7 = inlined_call_operand.vmem [shape: f32[2,1,96], index: 7, kind: input, shape index: {}]   ;;  %s3957_s8 = inlined_call_operand.vmem [shape: bf16[2,32,32], index: 8, kind: input, shape index: {}]   ;;  %s3958_s9 = inlined_call_operand.vmem [shape: f32[2,1,32], index: 9, kind: input, shape index: {}]   ;;  %s3959_s10 = inlined_call_operand.vmem [shape: f32[2,1,32], index: 10, kind: input, shape index: {}]   ;;  %s3960_s11 = inlined_call_operand.vmem [shape: f32[2,1,32], index: 11, kind: input, shape index: {}]   ;;  %s3961_s12 = inlined_call_operand.vmem [shape: bf16[2,32,128], index: 12, kind: input, shape index: {}]   ;;  %s3962_s13 = inlined_call_operand.vmem [shape: f32[2,1,128], index: 13, kind: input, shape index: {}]   ;;  %s3963_s14 = inlined_call_operand.vmem [shape: bf16[2,128,32], index: 14, kind: input, shape index: {}]   ;;  %s3964_s15 = inlined_call_operand.vmem [shape: f32[2,1,32], index: 15, kind: input, shape index: {}]   ;;  %s3965_s16 = inlined_call_operand.vmem [shape: f32[2,1,32], index: 16, kind: input, shape index: {}]   ;;  %s3966_s17 = inlined_call_operand.vmem [shape: f32[2,1,32], index: 17, kind: input, shape index: {}]   ;;  %s3967_s18 = inlined_call_operand.vmem [shape: bf16[32,32], index: 18, kind: input, shape index: {}]   ;;  %s3968_s19 = inlined_call_operand.vmem [shape: f32[1,32], index: 19, kind: input, shape index: {}]   ;;  %s3969_s20 = inlined_call_operand.vmem [shape: bf16[32,128], index: 20, kind: input, shape index: {}]   ;;  %s3970_s21 = inlined_call_operand.vmem [shape: bf16[128,32], index: 21, kind: input, shape index: {}]   ;;  %s3971_s22 = inlined_call_operand.vmem [shape: f32[1,128], index: 22, kind: input, shape index: {}]   ;;  %s3972_s23 = inlined_call_operand.vmem [shape: bf16[32,128], index: 23, kind: input, shape index: {}]   ;;  %s3973_s24 = inlined_call_operand.vmem [shape: f32[1,128], index: 24, kind: input, shape index: {}]   ;;  %s3974_s25 = inlined_call_operand.hbm [shape: f32[2,128], index: 25, kind: output, shape index: {0}]   ;;  %s3975_s26 = inlined_call_operand.hbm [shape: f32[2,128], index: 26, kind: output, shape index: {1}]  }
   0x1   :  { %3996 = sst [smem:[#allocation8_spill]] %s3949_s0 }
   0x2   :  { %3997 = sst [smem:[#allocation9_spill]] %s3950_s1 }
   0x3   :  { %3998 = sst [smem:[#allocation10_spill]] %s3951_s2 }
   0x4   :  { %3999 = sst [smem:[#allocation11_spill]] %s3952_s3 }
   0x5   :  { %4000 = sst [smem:[#allocation12_spill]] %s3953_s4 }
   0x6   :  { %4001 = sst [smem:[#allocation13_spill]] %s3954_s5 }
   0x7   :  { %4002 = sst [smem:[#allocation14_spill]] %s3955_s6 }
   0x8   :  { %4003 = sst [smem:[#allocation15_spill]] %s3956_s7 }
   0x9   :  { %4004 = sst [smem:[#allocation16_spill]] %s3957_s8 }
   0xa   :  { %4005 = sst [smem:[#allocation17_spill]] %s3958_s9 }
   0xb   :  { %4006 = sst [smem:[#allocation18_spill]] %s3959_s10 }
   0xc   :  { %32 = vsyncpa [#allocation3], 0  ;;  %s4007_s7 = sld [smem:[#allocation9_spill]]  ;;  %v87_v1 = vlaneseq  ;;  %v3214_v3 = vmov 0   ;;  %vm117_vm1 = vcmask 1041408   ;;  %v3215_v16 = vmov 0.0  }
   0xd   :  { %s4008_s4 = sld [smem:[#allocation8_spill]]  ;;  %3001 = vset.pattern.permute.xlu0 %v3214_v3  ;;  %2753 = vmatprep.subr.bf16.mxu1 %v3215_v16 }
   0xe   :  { %s4009_s9 = sld [smem:[#allocation10_spill]]  ;;  %v88_v6 = vand.u32 127, %v87_v1  ;;  %v243_v7 = vshrl.u32 %v87_v1, 7 }
  0x10   :  { %v244_v11 = vadd.s32 8, %v243_v7  ;;  %v245_v12 = vshra.s32 %v243_v7, 3  ;;  %v247_v13 = vshra.s32 %v88_v6, 3  ;;  %v255_v14 = vsub.s32 0, %v243_v7 }
  0x12   :  { %v250_v0 = vld [vmem:[%s4007_s7] sm:$0x1]  ;;  %v246_v17 = vshra.s32 %v244_v11, 3  ;;  %vm248_vm2 = vcmp.eq.s32.totalorder %v245_v12, %v247_v13 }
  0x13   :  { %v85_v2 = vld [vmem:[%s4008_s4] sm:$0xff]  ;;  %vm251_vm0 = vcmp.gt.s32.totalorder %v250_v0, 0  ;;  %v86_v9 = vld [vmem:[%s4008_s4 + $0x8] sm:$0xff] }
  0x14   :  { %v107_v4 = vld [vmem:[%s4009_s9 + $0x30] sm:$0x3]  ;;  %v106_v5 = vld [vmem:[%s4009_s9 + $0x28] sm:$0xff]  ;;  %90 = vperm.xlu0 %3001, %v85_v2   ;;  %v252_v8 = vsel %vm251_vm0, 1, %v3214_v3  ;;  %v105_v10 = vld [vmem:[%s4009_s9 + $0x20] sm:$0xff]  ;;  %vm249_vm3 = vcmp.eq.s32.totalorder %v246_v17, %v247_v13 }
  0x15   :  { %2736 = vmatprep.subr.msk.mxu0 %vm117_vm1, %v107_v4  ;;  %v104_v15 = vld [vmem:[%s4009_s9 + $0x18] sm:$0xff]  ;;  %v256_v18 = vrot.slane %v252_v8, %v255_v14  ;;  %v103_v19 = vld [vmem:[%s4009_s9 + $0x10] sm:$0xff]  ;;  %v102_v20 = vld [vmem:[%s4009_s9 + $0x8] sm:$0xff] }
  0x16   :  { %2737 = vmatpush3.msk.msra.mxu0 %vm117_vm1, %v107_v4  ;;  %v101_v23 = vld [vmem:[%s4009_s9] sm:$0xff] }
  0x17   :  { %2738 = vmatprep.subr.mxu0 %v106_v5  ;;  %vm257_vm4 = vcmp.eq.s32.totalorder %v256_v18, 1 }
  0x18   :  { %2739 = vmatpush3.msra.mxu0 %v106_v5  ;;  %93 = vperm.xlu0 %3001, %v86_v9   ;;  %vm3399_vm5 = vmand %vm248_vm2, %vm257_vm4 }
  0x19   :  { %2740 = vmatprep.subr.mxu0 %v105_v10  ;;  %vm3403_vm6 = vmand %vm249_vm3, %vm257_vm4 }
  0x1a   :  { %2741 = vmatpush3.msra.mxu0 %v105_v10 }
  0x1b   :  { %2742 = vmatprep.subr.mxu0 %v104_v15 }
  0x1c   :  { %2743 = vmatpush3.msra.mxu0 %v104_v15 }
  0x1d   :  { %2744 = vmatprep.subr.mxu0 %v103_v19 }
  0x1e   :  { %2745 = vmatpush3.msra.mxu0 %v103_v19 }
  0x1f   :  { %2746 = vmatprep.subr.mxu0 %v102_v20 }
  0x20   :  { %2747 = vmatpush3.msra.mxu0 %v102_v20 }
  0x21   :  { %2748 = vmatprep.subr.mxu0 %v101_v23 }
  0x22   :  { %2749 = vmatpush3.msra.mxu0 %v101_v23 }
  0x23   :  { %2767 = vmatprep.subr.bf16.mxu0 %v3215_v16 }
  0x24   :  { %33 = vsyncpa [#allocation5], 0  ;;  %vm110_vm7 = vcmask 408576   ;;  %s4014_s2 = sld [smem:[#allocation11_spill]]  ;;  %vm198_vm10 = vcmask 261120   ;;  %vm3216_vm11 = vmmov 0  }
  0x25   :  { %s4015_s27 = sld [smem:[#allocation14_spill]]  ;;  %2757 = vmatprep.mubr.msk.bf16.mxu1 %vm3216_vm11, %v3215_v16  ;;  %s3217_s10 = smov 96   ;;  %vm334_vm12 = vcmask 64512   ;;  %v3218_v11 = vmov -1e+09   ;;  %vm382_vm13 = vcmask 130048  }
  0x26   :  { %s4016_s4 = sld [smem:[#allocation12_spill]]  ;;  %v3465_v12 = vsel %vm3399_vm5, 0.0, %v3218_v11  ;;  %v3470_v15 = vsel %vm3403_vm6, 0.0, %v3218_v11  ;;  %s3219_s6 = smov 88   ;;  %vm844_vm14 = vcmask 195584   ;;  %vm2162_vm15 = vcmask 1040384  }
  0x27   :  { %s4017_s9 = sld [smem:[#allocation13_spill]]  ;;  %s3987_s1 = smov 72  }
  0x28   :  { %s4018_s5 = sld [smem:[#allocation15_spill]]  ;;  %s3991_s3 = smov 64  }
  0x29   :  { %s3995_s7 = smov 120   ;;  %s3994_s28 = smov 80  }
  0x2a   :  { %v108_v29 = vld [vmem:[%s4014_s2] sm:$0xff]  ;;  %v109_v30 = vld [vmem:[%s4014_s2 + $0x8] sm:$0xff]  ;;  %s3993_s8 = smov 112   ;;  %s3986_s29 = smov 48  }
  0x2b   :  { %v3032_v46 = vld [vmem:[%s4015_s27 + $0x8] sm:$0xff]   ;;  %v3033_v47 = vld [vmem:[%s4015_s27] sm:$0xff]   ;;  %s3984_s0 = smov 40   ;;  %s3989_s30 = smov 16  }
  0x2c   :  { %2754 = vmatpush3.bf16.msra.mxu1 %v3032_v46  ;;  %v2517_v56 = vld [vmem:[%s4016_s4] ss:$0 sm:$0xff]  ;;  %s3992_s4 = smov 104   ;;  %s3988_s2 = smov 24  }
  0x2d   :  { %2755 = vmatprep.subr.bf16.mxu1 %v3215_v16  ;;  %v2518_v60 = vld [vmem:[%s4017_s9] ss:$0 sm:$0xff]  ;;  %s3985_s9 = smov 56  }
  0x2e   :  { %v2519_v2 = vld [vmem:[%s4018_s5] ss:$0 sm:$0xff] }
  0x30   :  { %2756 = vmatpush3.bf16.msra.mxu1 %v3033_v47 }
  0x31   :  { %2761 = vmatprep.subr.bf16.mxu1 %v3215_v16 }
  0x8f   :  { %v91_v24 = vpop.permute.xlu0 %90 }
  0x90   :  { %vm95_vm8 = vcmp.eq.s32.totalorder %v88_v6, %v91_v24 }
  0x91   :  { %v2512_v25 = vsel %vm95_vm8, 1.0, %v3215_v16 }
  0x92   :  { %2750 = vmatprep.mubr.msk.f32.mxu0 %vm110_vm7, %v2512_v25 }
  0x93   :  { %v94_v26 = vpop.permute.xlu0 %93 }
  0x94   :  { %vm96_vm9 = vcmp.eq.s32.totalorder %v88_v6, %v94_v26 }
  0x95   :  { %v2513_v27 = vsel %vm96_vm9, 1.0, %v3215_v16 }
  0x96   :  { %2751 = vmatmul.mubr.msk.f32.vlgmr.msra.gmra.mxu0 %vm110_vm7, %v2513_v27 }
  0x97   :  { %2769 = vmatprep.mubr.msk.bf16.mxu0 %vm3216_vm11, %v3215_v16 }
 0x156   :  { %v2752_v28 = vpop.f32.mrf.mxu0 }
 0x157   :  { %v193_v33 = vadd.f32 %v2752_v28, %v109_v30 }
 0x158   :  { %v187_v31 = vpop.f32.mrf.mxu0 }
 0x159   :  { %v188_v32 = vadd.f32 %v187_v31, %v108_v29  ;;  %v202_v35 = vsel %vm198_vm10, %v193_v33, 0.0 }
 0x15b   :  { %v199_v34 = vsel %vm198_vm10, %v188_v32, 0.0 }
 0x15c   :  { %200 = vadd.xlane.f32.xlu1 %v199_v34 }
 0x160   :  { %203 = vadd.xlane.f32.xlu1 %v202_v35 }
 0x1e5   :  { %v201_v36 = vpop.xlane.xlu1 %200 }
 0x1e6   :  { %v206_v37 = vmul.f32 0.03125, %v201_v36 }
 0x1e8   :  { %v208_v38 = vsub.f32 %v188_v32, %v206_v37 }
 0x1e9   :  { %v204_v39 = vpop.xlane.xlu1 %203 }
 0x1ea   :  { %v207_v40 = vmul.f32 0.03125, %v204_v39  ;;  %v210_v41 = vmul.f32 %v208_v38, %v208_v38 }
 0x1ec   :  { %v209_v42 = vsub.f32 %v193_v33, %v207_v40  ;;  %v212_v43 = vsel %vm198_vm10, %v210_v41, 0.0 }
 0x1ed   :  { %213 = vadd.xlane.f32.xlu0 %v212_v43 }
 0x1ee   :  { %v211_v44 = vmul.f32 %v209_v42, %v209_v42 }
 0x1f0   :  { %v215_v45 = vsel %vm198_vm10, %v211_v44, 0.0 }
 0x1f1   :  { %216 = vadd.xlane.f32.xlu1 %v215_v45 }
 0x276   :  { %v214_v48 = vpop.xlane.xlu0 %213 }
 0x277   :  { %v218_v49 = vmul.f32 0.03125, %v214_v48 }
 0x279   :  { %v220_v50 = vadd.f32 1e-12, %v218_v49 }
 0x27a   :  { %v217_v51 = vpop.xlane.xlu1 %216 }
 0x27b   :  { %3074 = vrsqrt.f32 %v220_v50  ;;  %v219_v52 = vmul.f32 0.03125, %v217_v51 }
 0x27d   :  { %v221_v53 = vadd.f32 1e-12, %v219_v52 }
 0x27f   :  { %3076 = vrsqrt.f32 %v221_v53 }
 0x288   :  { %v3075_v54 = vpop.eup %3074 }
 0x289   :  { %v224_v55 = vmul.f32 %v3075_v54, %v208_v38 }
 0x28b   :  { %v232_v59 = vmul.f32 %v2517_v56, %v224_v55 }
 0x28c   :  { %v3077_v57 = vpop.eup %3076 }
 0x28d   :  { %v225_v58 = vmul.f32 %v3077_v57, %v209_v42  ;;  %v3441_v62 = vadd.f32 %v2518_v60, %v232_v59 }
 0x28f   :  { %v233_v61 = vmul.f32 %v2517_v56, %v225_v58 }
 0x291   :  { %v3443_v63 = vadd.f32 %v2518_v60, %v233_v61 }
 0x293   :  { %v262_v0 = vpack.c.bf16 %v3443_v63, %v3441_v62 }
 0x295   :  { %2758 = vmatmul.mubr.msk.bf16.vlgmr.msra.gmra.mxu1 %vm198_vm10, %v262_v0 }
 0x296   :  { %2763 = vmatprep.mubr.msk.bf16.mxu1 %vm3216_vm11, %v3215_v16 }
 0x355   :  { %v323_v1 = vpop.f32.mrf.mxu1 }
 0x356   :  { %v324_v5 = vadd.f32 %v2519_v2, %v323_v1 }
 0x357   :  { %v2759_v3 = vpop.f32.mrf.mxu1 }
 0x359   :  { %v326_v4 = vpop.f32.mrf.mxu1 }
 0x35a   :  { %v327_v6 = vadd.f32 %v2519_v2, %v326_v4 }
 0x35b   :  { %v2760_v7 = vpop.f32.mrf.mxu1 }
 0x35c   :  { %v3453_v8 = vpack.c.bf16 %v327_v6, %v324_v5 }
 0x35e   :  { %332 = vrot.lane.b32.xlu1 %v3453_v8, %s3217_s10 }
 0x3d0   :  { %v333_v9 = vpop.permute.xlu1 %332 }
 0x3d1   :  { %v339_v10 = vsel %vm334_vm12, %v333_v9, 0 }
 0x3d2   :  { %2762 = vmatpush3.bf16.xpose.msra.mxu1 %v339_v10 }
 0x3d3   :  { %2785 = vmatprep.subr.bf16.mxu1 %v3215_v16 }
 0x3d9   :  { %2764 = vmatmul.mubr.msk.bf16.vlgmr.msra.gmra.mxu1 %vm334_vm12, %v3453_v8 }
 0x3da   :  { %2787 = vmatprep.mubr.msk.bf16.mxu1 %vm3216_vm11, %v3215_v16 }
 0x499   :  { %v375_v13 = vpop.f32.mrf.mxu1 }
 0x49a   :  { %v376_v14 = vadd.f32 %v375_v13, %v3465_v12 }
 0x49b   :  { %v2765_v17 = vpop.f32.mrf.mxu1 }
 0x49c   :  { %v383_v18 = vsel %vm382_vm13, %v376_v14, -inf }
 0x49d   :  { %384 = vmax.xlane.f32.xlu1 %v383_v18  ;;  %v378_v19 = vpop.f32.mrf.mxu1 }
 0x49e   :  { %v379_v20 = vadd.f32 %v378_v19, %v3470_v15 }
 0x49f   :  { %v2766_v23 = vpop.f32.mrf.mxu1 }
 0x4a0   :  { %v386_v21 = vsel %vm382_vm13, %v379_v20, -inf }
 0x4a1   :  { %387 = vmax.xlane.f32.xlu0 %v386_v21 }
 0x4ae   :  { %455 = vrot.lane.b32.xlu1 %v3453_v8, %s3219_s6 }
 0x4b2   :  { %697 = vrot.lane.b32.xlu1 %v3453_v8, %s3987_s1  ;;  %s4028_s1 = smov 48  }
 0x526   :  { %v385_v22 = vpop.xlane.xlu1 %384 }
 0x527   :  { %v389_v24 = vsub.f32 %v376_v14, %v385_v22 }
 0x529   :  { %v391_v25 = vmul.f32 1.442695, %v389_v24 }
 0x52a   :  { %v388_v26 = vpop.xlane.xlu0 %387  ;;  %v456_v38 = vpop.permute.xlu1 %455 }
 0x52b   :  { %3078 = vpow2.f32 %v391_v25  ;;  %v390_v27 = vsub.f32 %v379_v20, %v388_v26  ;;  %v461_v46 = vsel %vm334_vm12, %v456_v38, 0 }
 0x52d   :  { %v393_v28 = vmul.f32 1.442695, %v390_v27 }
 0x52e   :  { %v698_v45 = vpop.permute.xlu1 %697 }
 0x52f   :  { %3080 = vpow2.f32 %v393_v28  ;;  %v703_v48 = vsel %vm334_vm12, %v698_v45, 0 }
 0x538   :  { %v3079_v29 = vpop.eup %3078 }
 0x539   :  { %v395_v30 = vsel %vm382_vm13, %v3079_v29, 0.0 }
 0x53a   :  { %396 = vadd.xlane.f32.xlu0 %v395_v30 }
 0x53c   :  { %v3081_v31 = vpop.eup %3080 }
 0x53d   :  { %v398_v32 = vsel %vm382_vm13, %v3081_v31, 0.0 }
 0x53e   :  { %399 = vadd.xlane.f32.xlu0 %v398_v32 }
 0x554   :  { %406 = vrot.lane.b32.xlu0 %v3453_v8, %s3991_s3  ;;  %s4021_s3 = sld [smem:[#allocation18_spill]] }
 0x558   :  { %453 = vrot.lane.b32.xlu0 %v3453_v8, %s3995_s7  ;;  %s4025_s7 = smov 104  }
 0x55c   :  { %576 = vrot.lane.b32.xlu0 %v3453_v8, %s3994_s28  ;;  %s4023_s28 = smov 80  }
 0x560   :  { %574 = vrot.lane.b32.xlu0 %v3453_v8, %s3993_s8  ;;  %s4031_s8 = smov 8  }
 0x564   :  { %695 = vrot.lane.b32.xlu0 %v3453_v8, %s3992_s4  ;;  %s4022_s4 = smov 120  }
 0x5c3   :  { %v397_v33 = vpop.xlane.xlu0 %396 }
 0x5c4   :  { %3082 = vrcp.f32 %v397_v33 }
 0x5c7   :  { %v400_v34 = vpop.xlane.xlu0 %399 }
 0x5c8   :  { %3084 = vrcp.f32 %v400_v34 }
 0x5cb   :  { %v407_v35 = vpop.permute.xlu0 %406 }
 0x5cc   :  { %2768 = vmatpush3.bf16.msra.mxu0 %v407_v35 }
 0x5cd   :  { %2773 = vmatprep.subr.bf16.mxu0 %v3215_v16 }
 0x5cf   :  { %v454_v36 = vpop.permute.xlu0 %453 }
 0x5d1   :  { %v3083_v37 = vpop.eup %3082 }
 0x5d2   :  { %v403_v42 = vmul.f32 %v3083_v37, %v3079_v29 }
 0x5d3   :  { %v577_v39 = vpop.permute.xlu0 %576 }
 0x5d4   :  { %v582_v40 = vsel %vm334_vm12, %v577_v39, 0 }
 0x5d5   :  { %v3085_v41 = vpop.eup %3084  ;;  %2786 = vmatpush3.bf16.xpose.msra.mxu1 %v582_v40 }
 0x5d6   :  { %v404_v43 = vmul.f32 %v3085_v41, %v3081_v31  ;;  %2797 = vmatprep.subr.bf16.mxu1 %v3215_v16 }
 0x5d7   :  { %v575_v47 = vpop.permute.xlu0 %574 }
 0x5d8   :  { %v405_v44 = vpack.c.bf16 %v404_v43, %v403_v42 }
 0x5da   :  { %2770 = vmatmul.mubr.msk.bf16.vlgmr.msra.gmra.mxu0 %vm382_vm13, %v405_v44 }
 0x5db   :  { %2774 = vmatpush3.bf16.xpose.msra.mxu0 %v461_v46  ;;  %2775 = vmatprep.mubr.msk.bf16.mxu0 %vm3216_vm11, %v3215_v16  ;;  %v696_v49 = vpop.permute.xlu0 %695 }
 0x5dc   :  { %2788 = vmatmul.mubr.msk.bf16.vlgmr.msra.gmra.mxu1 %vm334_vm12, %v575_v47  ;;  %2779 = vmatprep.subr.bf16.mxu0 %v3215_v16 }
 0x5dd   :  { %2798 = vmatpush3.bf16.xpose.msra.mxu1 %v703_v48  ;;  %2799 = vmatprep.mubr.msk.bf16.mxu1 %vm3216_vm11, %v3215_v16 }
 0x5de   :  { %2809 = vmatprep.subr.bf16.mxu1 %v3215_v16 }
 0x5e2   :  { %2776 = vmatmul.mubr.msk.bf16.vlgmr.msra.gmra.mxu0 %vm334_vm12, %v454_v36 }
 0x5e3   :  { %2781 = vmatprep.mubr.msk.bf16.mxu0 %vm3216_vm11, %v3215_v16 }
 0x5e4   :  { %2800 = vmatmul.mubr.msk.bf16.vlgmr.msra.gmra.mxu1 %vm334_vm12, %v696_v49 }
 0x5e5   :  { %2813 = vmatprep.mubr.msk.bf16.mxu1 %vm3216_vm11, %v3215_v16 }
 0x69a   :  { %v3510_v50 = vpop.f32.mrf.mxu0 }
 0x69c   :  { %v2771_v51 = vpop.f32.mrf.mxu0  ;;  %v618_v52 = vpop.f32.mrf.mxu1 }
 0x69d   :  { %v619_v7 = vadd.f32 %v618_v52, %v3465_v12 }
 0x69e   :  { %v3512_v53 = vpop.f32.mrf.mxu0  ;;  %v2789_v54 = vpop.f32.mrf.mxu1 }
 0x69f   :  { %v625_v17 = vsel %vm382_vm13, %v619_v7, -inf }
 0x6a0   :  { %v2772_v55 = vpop.f32.mrf.mxu0  ;;  %v621_v56 = vpop.f32.mrf.mxu1 }
 0x6a1   :  { %v622_v0 = vadd.f32 %v621_v56, %v3470_v15 }
 0x6a2   :  { %v497_v57 = vpop.f32.mrf.mxu0  ;;  %v2790_v58 = vpop.f32.mrf.mxu1 }
 0x6a3   :  { %v498_v59 = vadd.f32 %v497_v57, %v3465_v12  ;;  %v628_v11 = vsel %vm382_vm13, %v622_v0, -inf }
 0x6a4   :  { %v2777_v60 = vpop.f32.mrf.mxu0  ;;  %v739_v61 = vpop.f32.mrf.mxu1 }
 0x6a5   :  { %v504_v1 = vsel %vm382_vm13, %v498_v59, -inf  ;;  %v740_v14 = vadd.f32 %v739_v61, %v3465_v12 }
 0x6a6   :  { %505 = vmax.xlane.f32.xlu1 %v504_v1  ;;  %v500_v2 = vpop.f32.mrf.mxu0  ;;  %v2801_v3 = vpop.f32.mrf.mxu1 }
 0x6a7   :  { %v501_v4 = vadd.f32 %v500_v2, %v3470_v15  ;;  %v746_v19 = vsel %vm382_vm13, %v740_v14, -inf }
 0x6a8   :  { %v2778_v5 = vpop.f32.mrf.mxu0  ;;  %v742_v6 = vpop.f32.mrf.mxu1 }
 0x6a9   :  { %v743_v9 = vadd.f32 %v742_v6, %v3470_v15  ;;  %v507_v10 = vsel %vm382_vm13, %v501_v4, -inf }
 0x6aa   :  { %508 = vmax.xlane.f32.xlu0 %v507_v10  ;;  %629 = vmax.xlane.f32.xlu1 %v628_v11  ;;  %v2802_v13 = vpop.f32.mrf.mxu1 }
 0x6ab   :  { %v749_v18 = vsel %vm382_vm13, %v743_v9, -inf }
 0x6ae   :  { %626 = vmax.xlane.f32.xlu0 %v625_v17  ;;  %750 = vmax.xlane.f32.xlu1 %v749_v18 }
 0x6b2   :  { %747 = vmax.xlane.f32.xlu0 %v746_v19 }
 0x72f   :  { %v506_v20 = vpop.xlane.xlu1 %505 }
 0x730   :  { %v510_v30 = vsub.f32 %v498_v59, %v506_v20 }
 0x732   :  { %v512_v36 = vmul.f32 1.442695, %v510_v30 }
 0x733   :  { %v509_v23 = vpop.xlane.xlu0 %508  ;;  %v630_v21 = vpop.xlane.xlu1 %629 }
 0x734   :  { %v632_v22 = vsub.f32 %v622_v0, %v630_v21  ;;  %v511_v25 = vsub.f32 %v501_v4, %v509_v23 }
 0x736   :  { %v635_v24 = vmul.f32 1.442695, %v632_v22  ;;  %v514_v33 = vmul.f32 1.442695, %v511_v25 }
 0x737   :  { %v627_v26 = vpop.xlane.xlu0 %626  ;;  %v751_v27 = vpop.xlane.xlu1 %750 }
 0x738   :  { %v631_v28 = vsub.f32 %v619_v7, %v627_v26  ;;  %v753_v29 = vsub.f32 %v743_v9, %v751_v27  ;;  %3086 = vpow2.f32 %v635_v24 }
 0x73a   :  { %v633_v31 = vmul.f32 1.442695, %v631_v28  ;;  %v756_v32 = vmul.f32 1.442695, %v753_v29 }
 0x73b   :  { %v748_v34 = vpop.xlane.xlu0 %747 }
 0x73c   :  { %3088 = vpow2.f32 %v633_v31  ;;  %v752_v35 = vsub.f32 %v740_v14, %v748_v34 }
 0x73d   :  { %3090 = vpow2.f32 %v756_v32 }
 0x73e   :  { %v754_v37 = vmul.f32 1.442695, %v752_v35  ;;  %3092 = vpow2.f32 %v514_v33 }
 0x740   :  { %3094 = vpow2.f32 %v754_v37 }
 0x741   :  { %3096 = vpow2.f32 %v512_v36 }
 0x745   :  { %v3087_v38 = vpop.eup %3086 }
 0x746   :  { %v640_v39 = vsel %vm382_vm13, %v3087_v38, 0.0 }
 0x747   :  { %641 = vadd.xlane.f32.xlu1 %v640_v39 }
 0x749   :  { %v3089_v40 = vpop.eup %3088 }
 0x74a   :  { %v3091_v41 = vpop.eup %3090  ;;  %v637_v42 = vsel %vm382_vm13, %v3089_v40, 0.0 }
 0x74b   :  { %638 = vadd.xlane.f32.xlu0 %v637_v42  ;;  %v761_v43 = vsel %vm382_vm13, %v3091_v41, 0.0  ;;  %v3093_v44 = vpop.eup %3092 }
 0x74c   :  { %762 = vadd.xlane.f32.xlu1 %v761_v43  ;;  %v519_v48 = vsel %vm382_vm13, %v3093_v44, 0.0 }
 0x74d   :  { %v3095_v45 = vpop.eup %3094 }
 0x74e   :  { %v758_v46 = vsel %vm382_vm13, %v3095_v45, 0.0  ;;  %v3097_v47 = vpop.eup %3096 }
 0x74f   :  { %759 = vadd.xlane.f32.xlu0 %v758_v46  ;;  %v516_v49 = vsel %vm382_vm13, %v3097_v47, 0.0 }
 0x750   :  { %520 = vadd.xlane.f32.xlu1 %v519_v48 }
 0x753   :  { %517 = vadd.xlane.f32.xlu0 %v516_v49 }
 0x761   :  { %648 = vrot.lane.b32.xlu1 %v3453_v8, %s3986_s29  ;;  %s4029_s29 = smov 56  }
 0x765   :  { %769 = vrot.lane.b32.xlu1 %v3453_v8, %s3984_s0  ;;  %s4019_s0 = sld [smem:[#allocation16_spill]] }
 0x769   :  { %527 = vrot.lane.b32.xlu0 %v3453_v8, %s3985_s9  ;;  %s3990_s9 = smov 8  }
 0x76b   :  { %v3034_v20 = vld [vmem:[%s4019_s0 + $0x8] sm:$0xff]   ;;  %v3035_v25 = vld [vmem:[%s4019_s0] sm:$0xff]  }
 0x76c   :  { %2810 = vmatpush3.bf16.msra.mxu1 %v3034_v20  ;;  %v2535_v20 = vld [vmem:[%s4021_s3] ss:$0 sm:$0xff] }
 0x76d   :  { %2811 = vmatprep.subr.bf16.mxu1 %v3215_v16 }
 0x770   :  { %2812 = vmatpush3.bf16.msra.mxu1 %v3035_v25 }
 0x771   :  { %2825 = vmatprep.subr.bf16.mxu1 %v3215_v16 }
 0x7d0   :  { %v642_v51 = vpop.xlane.xlu1 %641 }
 0x7d4   :  { %v639_v52 = vpop.xlane.xlu0 %638 }
 0x7d5   :  { %v763_v54 = vpop.xlane.xlu1 %762 }
 0x7d8   :  { %v760_v55 = vpop.xlane.xlu0 %759 }
 0x7d9   :  { %v521_v56 = vpop.xlane.xlu1 %520 }
 0x7da   :  { %3098 = vrcp.f32 %v521_v56 }
 0x7dc   :  { %v518_v57 = vpop.xlane.xlu0 %517 }
 0x7dd   :  { %3100 = vrcp.f32 %v518_v57  ;;  %v649_v2 = vpop.permute.xlu1 %648 }
 0x7de   :  { %3102 = vrcp.f32 %v639_v52 }
 0x7df   :  { %3104 = vrcp.f32 %v642_v51 }
 0x7e0   :  { %v528_v58 = vpop.permute.xlu0 %527  ;;  %3106 = vrcp.f32 %v760_v55 }
 0x7e1   :  { %2780 = vmatpush3.bf16.msra.mxu0 %v528_v58  ;;  %3108 = vrcp.f32 %v763_v54  ;;  %v770_v9 = vpop.permute.xlu1 %769 }
 0x7e2   :  { %2791 = vmatprep.subr.bf16.mxu0 %v3215_v16 }
 0x7e7   :  { %v3099_v59 = vpop.eup %3098 }
 0x7e8   :  { %v525_v8 = vmul.f32 %v3099_v59, %v3093_v44 }
 0x7ea   :  { %v3101_v60 = vpop.eup %3100 }
 0x7eb   :  { %v524_v61 = vmul.f32 %v3101_v60, %v3097_v47  ;;  %v3103_v1 = vpop.eup %3102 }
 0x7ec   :  { %v3105_v3 = vpop.eup %3104  ;;  %v645_v4 = vmul.f32 %v3103_v1, %v3089_v40 }
 0x7ed   :  { %v526_v0 = vpack.c.bf16 %v525_v8, %v524_v61  ;;  %v646_v5 = vmul.f32 %v3105_v3, %v3087_v38  ;;  %v3107_v7 = vpop.eup %3106 }
 0x7ee   :  { %v3109_v10 = vpop.eup %3108  ;;  %v766_v11 = vmul.f32 %v3107_v7, %v3095_v45  ;;  %v3037_v7 = vld [vmem:[%s3961_s12] sm:$0xff]  }
 0x7ef   :  { %2782 = vmatmul.mubr.msk.bf16.vlgmr.msra.gmra.mxu0 %vm382_vm13, %v526_v0  ;;  %v647_v6 = vpack.c.bf16 %v646_v5, %v645_v4  ;;  %v767_v13 = vmul.f32 %v3109_v10, %v3091_v41 }
 0x7f0   :  { %2792 = vmatpush3.bf16.msra.mxu0 %v649_v2  ;;  %2793 = vmatprep.mubr.msk.bf16.mxu0 %vm3216_vm11, %v3215_v16 }
 0x7f1   :  { %2803 = vmatprep.subr.bf16.mxu0 %v3215_v16  ;;  %v768_v14 = vpack.c.bf16 %v767_v13, %v766_v11 }
 0x7f7   :  { %2794 = vmatmul.mubr.msk.bf16.vlgmr.msra.gmra.mxu0 %vm382_vm13, %v647_v6 }
 0x7f8   :  { %2804 = vmatpush3.bf16.msra.mxu0 %v770_v9  ;;  %2805 = vmatprep.mubr.msk.bf16.mxu0 %vm3216_vm11, %v3215_v16 }
 0x7f9   :  { %2817 = vmatprep.subr.bf16.mxu0 %v3215_v16 }
 0x7ff   :  { %2806 = vmatmul.mubr.msk.bf16.vlgmr.msra.gmra.mxu0 %vm382_vm13, %v768_v14 }
 0x800   :  { %2821 = vmatprep.mubr.msk.bf16.mxu0 %vm3216_vm11, %v3215_v16 }
 0x8af   :  { %v567_v17 = vpop.f32.mrf.mxu0 }
 0x8b1   :  { %v2783_v18 = vpop.f32.mrf.mxu0 }
 0x8b3   :  { %v570_v19 = vpop.f32.mrf.mxu0 }
 0x8b4   :  { %v3002_v23 = vpack.i.bf16 %v570_v19, %v567_v17 }
 0x8b5   :  { %v2784_v21 = vpop.f32.mrf.mxu0 }
 0x8b6   :  { %3003 = vrot.lane.b32.xlu0 %v3002_v23, %s3990_s9 }
 0x8b7   :  { %v688_v22 = vpop.f32.mrf.mxu0 }
 0x8b9   :  { %v2795_v24 = vpop.f32.mrf.mxu0 }
 0x8ba   :  { %v2536_v24 = vld [vmem:[%s3960_s11] ss:$0 sm:$0xff] }
 0x8bb   :  { %v691_v26 = vpop.f32.mrf.mxu0 }
 0x8bc   :  { %v3007_v27 = vpack.i.bf16 %v691_v26, %v688_v22 }
 0x8bd   :  { %v2796_v28 = vpop.f32.mrf.mxu0 }
 0x8be   :  { %3008 = vrot.lane.b32.xlu1 %v3007_v27, %s3989_s30 }
 0x8bf   :  { %v809_v29 = vpop.f32.mrf.mxu0 }
 0x8c1   :  { %v2807_v30 = vpop.f32.mrf.mxu0 }
 0x8c2   :  { %v3039_v30 = vld [vmem:[%s3963_s14 + $0x30] sm:$0xff]  }
 0x8c3   :  { %v812_v31 = vpop.f32.mrf.mxu0 }
 0x8c4   :  { %v3012_v32 = vpack.i.bf16 %v812_v31, %v809_v29  ;;  %v3038_v29 = vld [vmem:[%s3963_s14 + $0x38] sm:$0xff]   ;;  %v3040_v31 = vld [vmem:[%s3963_s14 + $0x28] sm:$0xff]  }
 0x8c5   :  { %v2808_v33 = vpop.f32.mrf.mxu0 }
 0x8c6   :  { %3013 = vrot.lane.b32.xlu0 %v3012_v32, %s3988_s2  ;;  %s4020_s2 = sld [smem:[#allocation17_spill]]  ;;  %v3041_v32 = vld [vmem:[%s3963_s14 + $0x20] sm:$0xff]   ;;  %v3042_v33 = vld [vmem:[%s3963_s14 + $0x18] sm:$0xff]  }
 0x928   :  { %v3004_v34 = vpop.permute.xlu0 %3003 }
 0x929   :  { %v3006_v36 = vunpack.i.h.bf16 %v3004_v34  ;;  %v3005_v37 = vunpack.i.l.bf16 %v3004_v34  ;;  %v3043_v34 = vld [vmem:[%s3963_s14 + $0x10] sm:$0xff]  }
 0x92b   :  { %v841_v41 = vsel %vm334_vm12, %v3512_v53, %v3006_v36  ;;  %v840_v42 = vsel %vm334_vm12, %v3510_v50, %v3005_v37  ;;  %v2531_v50 = vld [vmem:[%s4020_s2] ss:$0 sm:$0xff] }
 0x92c   :  { %v3045_v36 = vld [vmem:[%s3963_s14] sm:$0xff]  }
 0x92d   :  { %v2537_v37 = vld [vmem:[%s3962_s13] ss:$0 sm:$0xff] }
 0x930   :  { %v3009_v35 = vpop.permute.xlu1 %3008 }
 0x931   :  { %v3011_v38 = vunpack.i.h.bf16 %v3009_v35  ;;  %v3010_v39 = vunpack.i.l.bf16 %v3009_v35  ;;  %v3044_v35 = vld [vmem:[%s3963_s14 + $0x8] sm:$0xff]  }
 0x933   :  { %v843_v45 = vsel %vm382_vm13, %v841_v41, %v3011_v38  ;;  %v842_v46 = vsel %vm382_vm13, %v840_v42, %v3010_v39 }
 0x938   :  { %v3014_v40 = vpop.permute.xlu0 %3013 }
 0x939   :  { %v3016_v43 = vunpack.i.h.bf16 %v3014_v40  ;;  %v3015_v44 = vunpack.i.l.bf16 %v3014_v40 }
 0x93b   :  { %v845_v47 = vsel %vm844_vm14, %v842_v46, %v3015_v44  ;;  %v846_v48 = vsel %vm844_vm14, %v843_v45, %v3016_v43 }
 0x93c   :  { %v847_v49 = vpack.c.bf16 %v846_v48, %v845_v47 }
 0x93e   :  { %2814 = vmatmul.mubr.msk.bf16.vlgmr.msra.gmra.mxu1 %vm198_vm10, %v847_v49 }
 0x93f   :  { %2841 = vmatprep.mubr.msk.bf16.mxu1 %vm3216_vm11, %v3215_v16  ;;  %2826 = vmatpush3.bf16.msra.mxu1 %v3038_v29 }
 0x940   :  { %2827 = vmatprep.subr.bf16.mxu1 %v3215_v16 }
 0x943   :  { %2828 = vmatpush3.bf16.msra.mxu1 %v3039_v30 }
 0x944   :  { %2829 = vmatprep.subr.bf16.mxu1 %v3215_v16 }
 0x947   :  { %2830 = vmatpush3.bf16.msra.mxu1 %v3040_v31 }
 0x948   :  { %2831 = vmatprep.subr.bf16.mxu1 %v3215_v16 }
 0x94b   :  { %2832 = vmatpush3.bf16.msra.mxu1 %v3041_v32 }
 0x94c   :  { %2833 = vmatprep.subr.bf16.mxu1 %v3215_v16 }
 0x94f   :  { %2834 = vmatpush3.bf16.msra.mxu1 %v3042_v33  ;;  %v2550_v33 = vld [vmem:[%s3965_s16] ss:$0 sm:$0xff] }
 0x950   :  { %2835 = vmatprep.subr.bf16.mxu1 %v3215_v16 }
 0x953   :  { %2836 = vmatpush3.bf16.msra.mxu1 %v3043_v34 }
 0x954   :  { %2837 = vmatprep.subr.bf16.mxu1 %v3215_v16 }
 0x957   :  { %2838 = vmatpush3.bf16.msra.mxu1 %v3044_v35 }
 0x958   :  { %2839 = vmatprep.subr.bf16.mxu1 %v3215_v16 }
 0x95b   :  { %2840 = vmatpush3.bf16.msra.mxu1 %v3045_v36 }
 0x95c   :  { %2871 = vmatprep.subr.bf16.mxu1 %v3215_v16 }
 0x9fe   :  { %v908_v53 = vpop.f32.mrf.mxu1 }
 0x9ff   :  { %v909_v51 = vadd.f32 %v2531_v50, %v908_v53 }
 0xa00   :  { %v2815_v52 = vpop.f32.mrf.mxu1 }
 0xa01   :  { %v915_v54 = vadd.f32 %v909_v51, %v3441_v62 }
 0xa02   :  { %v911_v55 = vpop.f32.mrf.mxu1 }
 0xa03   :  { %v912_v56 = vadd.f32 %v2531_v50, %v911_v55  ;;  %v919_v57 = vsel %vm198_vm10, %v915_v54, 0.0 }
 0xa04   :  { %920 = vadd.xlane.f32.xlu1 %v919_v57  ;;  %v2816_v58 = vpop.f32.mrf.mxu1 }
 0xa05   :  { %v916_v59 = vadd.f32 %v912_v56, %v3443_v63  ;;  %v3036_v63 = vld [vmem:[%s3961_s12 + $0x8] sm:$0xff]  }
 0xa06   :  { %2818 = vmatpush3.bf16.msra.mxu0 %v3036_v63 }
 0xa07   :  { %v922_v60 = vsel %vm198_vm10, %v916_v59, 0.0  ;;  %2819 = vmatprep.subr.bf16.mxu0 %v3215_v16 }
 0xa08   :  { %923 = vadd.xlane.f32.xlu0 %v922_v60 }
 0xa0a   :  { %2820 = vmatpush3.bf16.msra.mxu0 %v3037_v7 }
 0xa0b   :  { %2845 = vmatprep.subr.bf16.mxu0 %v3215_v16 }
 0xa8d   :  { %v921_v61 = vpop.xlane.xlu1 %920 }
 0xa8e   :  { %v925_v8 = vmul.f32 0.03125, %v921_v61 }
 0xa90   :  { %v927_v0 = vsub.f32 %v915_v54, %v925_v8 }
 0xa91   :  { %v924_v1 = vpop.xlane.xlu0 %923 }
 0xa92   :  { %v926_v2 = vmul.f32 0.03125, %v924_v1  ;;  %v929_v3 = vmul.f32 %v927_v0, %v927_v0 }
 0xa94   :  { %v928_v4 = vsub.f32 %v916_v59, %v926_v2  ;;  %v931_v62 = vsel %vm198_vm10, %v929_v3, 0.0 }
 0xa95   :  { %932 = vadd.xlane.f32.xlu0 %v931_v62 }
 0xa96   :  { %v930_v5 = vmul.f32 %v928_v4, %v928_v4 }
 0xa98   :  { %v934_v6 = vsel %vm198_vm10, %v930_v5, 0.0 }
 0xa99   :  { %935 = vadd.xlane.f32.xlu1 %v934_v6 }
 0xb1e   :  { %v933_v9 = vpop.xlane.xlu0 %932 }
 0xb1f   :  { %v937_v10 = vmul.f32 0.03125, %v933_v9 }
 0xb21   :  { %v939_v11 = vadd.f32 1e-12, %v937_v10 }
 0xb22   :  { %v936_v13 = vpop.xlane.xlu1 %935 }
 0xb23   :  { %3110 = vrsqrt.f32 %v939_v11  ;;  %v938_v14 = vmul.f32 0.03125, %v936_v13 }
 0xb25   :  { %v940_v17 = vadd.f32 1e-12, %v938_v14 }
 0xb27   :  { %3112 = vrsqrt.f32 %v940_v17 }
 0xb30   :  { %v3111_v18 = vpop.eup %3110 }
 0xb31   :  { %v943_v19 = vmul.f32 %v3111_v18, %v927_v0  ;;  %v2541_v0 = vld [vmem:[%s3964_s15] ss:$0 sm:$0xff] }
 0xb33   :  { %v951_v22 = vmul.f32 %v2535_v20, %v943_v19 }
 0xb34   :  { %v3113_v23 = vpop.eup %3112 }
 0xb35   :  { %v944_v21 = vmul.f32 %v3113_v23, %v928_v4  ;;  %v3595_v26 = vadd.f32 %v2536_v24, %v951_v22  ;;  %v3046_v22 = vld [vmem:[%s4015_s27 + $0x18] sm:$0xff]  }
 0xb37   :  { %v952_v25 = vmul.f32 %v2535_v20, %v944_v21 }
 0xb39   :  { %v3597_v27 = vadd.f32 %v2536_v24, %v952_v25  ;;  %v3047_v24 = vld [vmem:[%s4015_s27 + $0x10] sm:$0xff]   ;;  %s4030_s27 = smov 40  }
 0xb3b   :  { %v961_v28 = vpack.c.bf16 %v3597_v27, %v3595_v26 }
 0xb3d   :  { %2822 = vmatmul.mubr.msk.bf16.vlgmr.msra.gmra.mxu0 %vm198_vm10, %v961_v28 }
 0xb3e   :  { %2849 = vmatprep.mubr.msk.bf16.mxu0 %vm3216_vm11, %v3215_v16  ;;  %2846 = vmatpush3.bf16.msra.mxu0 %v3046_v22 }
 0xb3f   :  { %2847 = vmatprep.subr.bf16.mxu0 %v3215_v16 }
 0xb42   :  { %2848 = vmatpush3.bf16.msra.mxu0 %v3047_v24 }
 0xb43   :  { %2853 = vmatprep.subr.bf16.mxu0 %v3215_v16 }
 0xbfd   :  { %v1022_v38 = vpop.f32.mrf.mxu0 }
 0xbfe   :  { %v1023_v39 = vadd.f32 %v2537_v37, %v1022_v38 }
 0xbff   :  { %v2823_v40 = vpop.f32.mrf.mxu0 }
 0xc00   :  { %v1031_v41 = vmul.f32 0.044715, %v1023_v39  ;;  %v1029_v57 = vmul.f32 0.5, %v1023_v39 }
 0xc01   :  { %v1025_v42 = vpop.f32.mrf.mxu0 }
 0xc02   :  { %v1033_v43 = vmul.f32 %v1031_v41, %v1023_v39  ;;  %v1026_v44 = vadd.f32 %v2537_v37, %v1025_v42  ;;  %v2551_v37 = vld [vmem:[%s3966_s17] ss:$0 sm:$0xff] }
 0xc03   :  { %v2824_v45 = vpop.f32.mrf.mxu0 }
 0xc04   :  { %v1035_v46 = vmul.f32 %v1033_v43, %v1023_v39  ;;  %v1032_v47 = vmul.f32 0.044715, %v1026_v44  ;;  %v1030_v58 = vmul.f32 0.5, %v1026_v44  ;;  %v2557_v43 = vld [vmem:[%s4018_s5 + $0x1] ss:$0 sm:$0xff]  ;;  %s4024_s5 = smov 112  }
 0xc06   :  { %v1037_v48 = vadd.f32 %v1035_v46, %v1023_v39  ;;  %v1034_v49 = vmul.f32 %v1032_v47, %v1026_v44 }
 0xc08   :  { %v1039_v50 = vmul.f32 0.7978846, %v1037_v48  ;;  %v1036_v53 = vmul.f32 %v1034_v49, %v1026_v44 }
 0xc0a   :  { %3114 = vtanh.f32 %v1039_v50  ;;  %v1038_v51 = vadd.f32 %v1036_v53, %v1026_v44 }
 0xc0c   :  { %v1040_v52 = vmul.f32 0.7978846, %v1038_v51 }
 0xc0e   :  { %3116 = vtanh.f32 %v1040_v52 }
 0xc17   :  { %v3115_v54 = vpop.eup %3114 }
 0xc18   :  { %v1043_v55 = vadd.f32 1.0, %v3115_v54 }
 0xc1a   :  { %v1045_v60 = vmul.f32 %v1043_v55, %v1029_v57 }
 0xc1b   :  { %v3117_v56 = vpop.eup %3116 }
 0xc1c   :  { %v1044_v59 = vadd.f32 1.0, %v3117_v56 }
 0xc1e   :  { %v1046_v61 = vmul.f32 %v1044_v59, %v1030_v58 }
 0xc20   :  { %v1047_v8 = vpack.c.bf16 %v1046_v61, %v1045_v60 }
 0xc22   :  { %2842 = vmatmul.mubr.bf16.vlgmr.msra.gmra.mxu1 %v1047_v8 }
 0xc23   :  { %2873 = vmatprep.mubr.msk.bf16.mxu1 %vm3216_vm11, %v3215_v16 }
 0xce2   :  { %v1153_v1 = vpop.f32.mrf.mxu1 }
 0xce3   :  { %v1154_v2 = vadd.f32 %v2541_v0, %v1153_v1 }
 0xce4   :  { %v2843_v3 = vpop.f32.mrf.mxu1 }
 0xce5   :  { %v1160_v4 = vadd.f32 %v1154_v2, %v3595_v26 }
 0xce6   :  { %v1156_v62 = vpop.f32.mrf.mxu1 }
 0xce7   :  { %v1157_v5 = vadd.f32 %v2541_v0, %v1156_v62  ;;  %v1164_v6 = vsel %vm198_vm10, %v1160_v4, 0.0 }
 0xce8   :  { %1165 = vadd.xlane.f32.xlu0 %v1164_v6  ;;  %v2844_v63 = vpop.f32.mrf.mxu1 }
 0xce9   :  { %v1161_v7 = vadd.f32 %v1157_v5, %v3597_v27 }
 0xceb   :  { %v1167_v9 = vsel %vm198_vm10, %v1161_v7, 0.0 }
 0xcec   :  { %1168 = vadd.xlane.f32.xlu1 %v1167_v9 }
 0xd71   :  { %v1166_v10 = vpop.xlane.xlu0 %1165 }
 0xd72   :  { %v1170_v11 = vmul.f32 0.03125, %v1166_v10 }
 0xd74   :  { %v1172_v13 = vsub.f32 %v1160_v4, %v1170_v11 }
 0xd75   :  { %v1169_v14 = vpop.xlane.xlu1 %1168 }
 0xd76   :  { %v1171_v17 = vmul.f32 0.03125, %v1169_v14  ;;  %v1174_v18 = vmul.f32 %v1172_v13, %v1172_v13 }
 0xd78   :  { %v1173_v19 = vsub.f32 %v1161_v7, %v1171_v17  ;;  %v1176_v20 = vsel %vm198_vm10, %v1174_v18, 0.0 }
 0xd79   :  { %1177 = vadd.xlane.f32.xlu0 %v1176_v20 }
 0xd7a   :  { %v1175_v23 = vmul.f32 %v1173_v19, %v1173_v19 }
 0xd7c   :  { %v1179_v21 = vsel %vm198_vm10, %v1175_v23, 0.0 }
 0xd7d   :  { %1180 = vadd.xlane.f32.xlu1 %v1179_v21 }
 0xe02   :  { %v1178_v25 = vpop.xlane.xlu0 %1177 }
 0xe03   :  { %v1182_v26 = vmul.f32 0.03125, %v1178_v25 }
 0xe05   :  { %v1184_v27 = vadd.f32 1e-12, %v1182_v26 }
 0xe06   :  { %v1181_v28 = vpop.xlane.xlu1 %1180 }
 0xe07   :  { %3118 = vrsqrt.f32 %v1184_v27  ;;  %v1183_v29 = vmul.f32 0.03125, %v1181_v28 }
 0xe09   :  { %v1185_v30 = vadd.f32 1e-12, %v1183_v29 }
 0xe0b   :  { %3120 = vrsqrt.f32 %v1185_v30 }
 0xe14   :  { %v3119_v31 = vpop.eup %3118 }
 0xe15   :  { %v1188_v32 = vmul.f32 %v3119_v31, %v1172_v13 }
 0xe17   :  { %v1196_v36 = vmul.f32 %v2550_v33, %v1188_v32 }
 0xe18   :  { %v3121_v34 = vpop.eup %3120 }
 0xe19   :  { %v1189_v35 = vmul.f32 %v3121_v34, %v1173_v19  ;;  %v3664_v39 = vadd.f32 %v2551_v37, %v1196_v36 }
 0xe1b   :  { %v1197_v38 = vmul.f32 %v2550_v33, %v1189_v35 }
 0xe1d   :  { %v3666_v40 = vadd.f32 %v2551_v37, %v1197_v38 }
 0xe1f   :  { %v1206_v41 = vpack.c.bf16 %v3666_v40, %v3664_v39 }
 0xe21   :  { %2850 = vmatmul.mubr.msk.bf16.vlgmr.msra.gmra.mxu0 %vm198_vm10, %v1206_v41 }
 0xe22   :  { %2855 = vmatprep.mubr.msk.bf16.mxu0 %vm3216_vm11, %v3215_v16 }
 0xee1   :  { %v1269_v42 = vpop.f32.mrf.mxu0 }
 0xee2   :  { %v1270_v46 = vadd.f32 %v2557_v43, %v1269_v42 }
 0xee3   :  { %v2851_v44 = vpop.f32.mrf.mxu0 }
 0xee5   :  { %v1272_v45 = vpop.f32.mrf.mxu0 }
 0xee6   :  { %v1273_v47 = vadd.f32 %v2557_v43, %v1272_v45 }
 0xee7   :  { %v2852_v48 = vpop.f32.mrf.mxu0 }
 0xee8   :  { %v3676_v49 = vpack.c.bf16 %v1273_v47, %v1270_v46 }
 0xeea   :  { %1278 = vrot.lane.b32.xlu0 %v3676_v49, %s3217_s10  ;;  %s4026_s10 = smov 64  }
 0xeee   :  { %1399 = vrot.lane.b32.xlu0 %v3676_v49, %s3219_s6  ;;  %s4027_s6 = smov 72  }
 0xef2   :  { %1397 = vrot.lane.b32.xlu0 %v3676_v49, %s4022_s4  ;;  %s4032_s4 = smov 16  }
 0xef6   :  { %1520 = vrot.lane.b32.xlu0 %v3676_v49, %s4023_s28 }
 0xefa   :  { %1518 = vrot.lane.b32.xlu0 %v3676_v49, %s4024_s5 }
 0xefe   :  { %1639 = vrot.lane.b32.xlu0 %v3676_v49, %s4025_s7  ;;  %s4033_s7 = smov 24  }
 0xf5c   :  { %v1279_v50 = vpop.permute.xlu0 %1278 }
 0xf5d   :  { %v1284_v53 = vsel %vm334_vm12, %v1279_v50, 0 }
 0xf5e   :  { %2854 = vmatpush3.bf16.xpose.msra.mxu0 %v1284_v53 }
 0xf5f   :  { %2859 = vmatprep.subr.bf16.mxu0 %v3215_v16 }
 0xf60   :  { %v1400_v10 = vpop.permute.xlu0 %1399 }
 0xf61   :  { %v1405_v19 = vsel %vm334_vm12, %v1400_v10, 0 }
 0xf64   :  { %v1398_v18 = vpop.permute.xlu0 %1397 }
 0xf65   :  { %2856 = vmatmul.mubr.msk.bf16.vlgmr.msra.gmra.mxu0 %vm334_vm12, %v3676_v49 }
 0xf66   :  { %2861 = vmatprep.mubr.msk.bf16.mxu0 %vm3216_vm11, %v3215_v16 }
 0xf68   :  { %v1521_v20 = vpop.permute.xlu0 %1520 }
 0xf69   :  { %v1526_v23 = vsel %vm334_vm12, %v1521_v20, 0 }
 0xf6c   :  { %v1519_v22 = vpop.permute.xlu0 %1518 }
 0xf70   :  { %v1640_v25 = vpop.permute.xlu0 %1639 }
0x1025   :  { %v1320_v51 = vpop.f32.mrf.mxu0 }
0x1026   :  { %v1321_v52 = vadd.f32 %v1320_v51, %v3465_v12 }
0x1027   :  { %v2857_v54 = vpop.f32.mrf.mxu0 }
0x1028   :  { %v1327_v55 = vsel %vm382_vm13, %v1321_v52, -inf }
0x1029   :  { %1328 = vmax.xlane.f32.xlu1 %v1327_v55  ;;  %v1323_v56 = vpop.f32.mrf.mxu0 }
0x102a   :  { %v1324_v57 = vadd.f32 %v1323_v56, %v3470_v15 }
0x102b   :  { %v2858_v58 = vpop.f32.mrf.mxu0 }
0x102c   :  { %v1330_v59 = vsel %vm382_vm13, %v1324_v57, -inf }
0x102d   :  { %1331 = vmax.xlane.f32.xlu1 %v1330_v59 }
0x10b2   :  { %v1329_v60 = vpop.xlane.xlu1 %1328 }
0x10b3   :  { %v1333_v61 = vsub.f32 %v1321_v52, %v1329_v60 }
0x10b5   :  { %v1335_v8 = vmul.f32 1.442695, %v1333_v61 }
0x10b6   :  { %v1332_v0 = vpop.xlane.xlu1 %1331 }
0x10b7   :  { %3122 = vpow2.f32 %v1335_v8  ;;  %v1334_v1 = vsub.f32 %v1324_v57, %v1332_v0 }
0x10b9   :  { %v1337_v2 = vmul.f32 1.442695, %v1334_v1 }
0x10bb   :  { %3124 = vpow2.f32 %v1337_v2 }
0x10c4   :  { %v3123_v3 = vpop.eup %3122 }
0x10c5   :  { %v1339_v4 = vsel %vm382_vm13, %v3123_v3, 0.0 }
0x10c6   :  { %1340 = vadd.xlane.f32.xlu1 %v1339_v4 }
0x10c8   :  { %v3125_v62 = vpop.eup %3124 }
0x10c9   :  { %v1342_v5 = vsel %vm382_vm13, %v3125_v62, 0.0 }
0x10ca   :  { %1343 = vadd.xlane.f32.xlu1 %v1342_v5 }
0x10db   :  { %1350 = vrot.lane.b32.xlu1 %v3676_v49, %s4026_s10 }
0x10df   :  { %1641 = vrot.lane.b32.xlu1 %v3676_v49, %s4027_s6 }
0x114f   :  { %v1341_v6 = vpop.xlane.xlu1 %1340 }
0x1150   :  { %3126 = vrcp.f32 %v1341_v6 }
0x1153   :  { %v1344_v63 = vpop.xlane.xlu1 %1343 }
0x1154   :  { %3128 = vrcp.f32 %v1344_v63 }
0x1157   :  { %v1351_v7 = vpop.permute.xlu1 %1350 }
0x1158   :  { %2860 = vmatpush3.bf16.msra.mxu0 %v1351_v7 }
0x1159   :  { %2865 = vmatprep.subr.bf16.mxu0 %v3215_v16 }
0x115b   :  { %v1642_v21 = vpop.permute.xlu1 %1641 }
0x115c   :  { %v1647_v24 = vsel %vm334_vm12, %v1642_v21, 0 }
0x115d   :  { %v3127_v9 = vpop.eup %3126 }
0x115e   :  { %v1347_v13 = vmul.f32 %v3127_v9, %v3123_v3 }
0x1161   :  { %v3129_v11 = vpop.eup %3128 }
0x1162   :  { %v1348_v14 = vmul.f32 %v3129_v11, %v3125_v62 }
0x1164   :  { %v1349_v17 = vpack.c.bf16 %v1348_v14, %v1347_v13 }
0x1166   :  { %2862 = vmatmul.mubr.msk.bf16.vlgmr.msra.gmra.mxu0 %vm382_vm13, %v1349_v17 }
0x1167   :  { %2866 = vmatpush3.bf16.xpose.msra.mxu0 %v1405_v19  ;;  %2867 = vmatprep.mubr.msk.bf16.mxu0 %vm3216_vm11, %v3215_v16 }
0x1168   :  { %2877 = vmatprep.subr.bf16.mxu0 %v3215_v16 }
0x116e   :  { %2868 = vmatmul.mubr.msk.bf16.vlgmr.msra.gmra.mxu0 %vm334_vm12, %v1398_v18 }
0x116f   :  { %2878 = vmatpush3.bf16.xpose.msra.mxu0 %v1526_v23  ;;  %2879 = vmatprep.mubr.msk.bf16.mxu0 %vm3216_vm11, %v3215_v16 }
0x1170   :  { %2889 = vmatprep.subr.bf16.mxu0 %v3215_v16 }
0x1176   :  { %2880 = vmatmul.mubr.msk.bf16.vlgmr.msra.gmra.mxu0 %vm334_vm12, %v1519_v22 }
0x1177   :  { %2890 = vmatpush3.bf16.xpose.msra.mxu0 %v1647_v24  ;;  %2891 = vmatprep.mubr.msk.bf16.mxu0 %vm3216_vm11, %v3215_v16 }
0x1178   :  { %2901 = vmatprep.subr.bf16.mxu0 %v3215_v16 }
0x117e   :  { %2892 = vmatmul.mubr.msk.bf16.vlgmr.msra.gmra.mxu0 %vm334_vm12, %v1640_v25 }
0x117f   :  { %2905 = vmatprep.mubr.msk.bf16.mxu0 %vm3216_vm11, %v3215_v16 }
0x1226   :  { %v3725_v26 = vpop.f32.mrf.mxu0 }
0x1228   :  { %v2863_v27 = vpop.f32.mrf.mxu0 }
0x122a   :  { %v3727_v28 = vpop.f32.mrf.mxu0 }
0x122c   :  { %v2864_v29 = vpop.f32.mrf.mxu0 }
0x122e   :  { %v1441_v30 = vpop.f32.mrf.mxu0 }
0x122f   :  { %v1442_v31 = vadd.f32 %v1441_v30, %v3465_v12 }
0x1230   :  { %v2869_v32 = vpop.f32.mrf.mxu0 }
0x1231   :  { %v1448_v33 = vsel %vm382_vm13, %v1442_v31, -inf }
0x1232   :  { %1449 = vmax.xlane.f32.xlu1 %v1448_v33  ;;  %v1444_v34 = vpop.f32.mrf.mxu0 }
0x1233   :  { %v1445_v35 = vadd.f32 %v1444_v34, %v3470_v15 }
0x1234   :  { %v2870_v36 = vpop.f32.mrf.mxu0 }
0x1235   :  { %v1451_v37 = vsel %vm382_vm13, %v1445_v35, -inf }
0x1236   :  { %1452 = vmax.xlane.f32.xlu0 %v1451_v37  ;;  %v1562_v38 = vpop.f32.mrf.mxu0 }
0x1237   :  { %v1563_v41 = vadd.f32 %v1562_v38, %v3465_v12 }
0x1238   :  { %v2881_v42 = vpop.f32.mrf.mxu0 }
0x1239   :  { %v1569_v43 = vsel %vm382_vm13, %v1563_v41, -inf }
0x123a   :  { %1570 = vmax.xlane.f32.xlu0 %v1569_v43  ;;  %v1565_v44 = vpop.f32.mrf.mxu0 }
0x123b   :  { %v1566_v45 = vadd.f32 %v1565_v44, %v3470_v15 }
0x123c   :  { %v2882_v46 = vpop.f32.mrf.mxu0 }
0x123d   :  { %v1572_v47 = vsel %vm382_vm13, %v1566_v45, -inf }
0x123e   :  { %1573 = vmax.xlane.f32.xlu1 %v1572_v47  ;;  %v1683_v48 = vpop.f32.mrf.mxu0 }
0x123f   :  { %v1684_v50 = vadd.f32 %v1683_v48, %v3465_v12 }
0x1240   :  { %v2893_v53 = vpop.f32.mrf.mxu0 }
0x1241   :  { %v1690_v51 = vsel %vm382_vm13, %v1684_v50, -inf }
0x1242   :  { %1691 = vmax.xlane.f32.xlu0 %v1690_v51  ;;  %v1686_v52 = vpop.f32.mrf.mxu0 }
0x1243   :  { %v1687_v54 = vadd.f32 %v1686_v52, %v3470_v15 }
0x1244   :  { %v2894_v55 = vpop.f32.mrf.mxu0 }
0x1245   :  { %v1693_v56 = vsel %vm382_vm13, %v1687_v54, -inf  ;;  %v3048_v55 = vld [vmem:[%s4019_s0 + $0x18] sm:$0xff]  }
0x1246   :  { %1694 = vmax.xlane.f32.xlu1 %v1693_v56  ;;  %2902 = vmatpush3.bf16.msra.mxu0 %v3048_v55 }
0x1247   :  { %2903 = vmatprep.subr.bf16.mxu0 %v3215_v16 }
0x12bb   :  { %v1450_v57 = vpop.xlane.xlu1 %1449 }
0x12bc   :  { %v1454_v58 = vsub.f32 %v1442_v31, %v1450_v57 }
0x12be   :  { %v1456_v59 = vmul.f32 1.442695, %v1454_v58 }
0x12bf   :  { %v1453_v60 = vpop.xlane.xlu0 %1452 }
0x12c0   :  { %3130 = vpow2.f32 %v1456_v59  ;;  %v1455_v61 = vsub.f32 %v1445_v35, %v1453_v60 }
0x12c2   :  { %v1458_v8 = vmul.f32 1.442695, %v1455_v61 }
0x12c3   :  { %v1571_v0 = vpop.xlane.xlu0 %1570 }
0x12c4   :  { %3132 = vpow2.f32 %v1458_v8  ;;  %v1575_v12 = vsub.f32 %v1563_v41, %v1571_v0  ;;  %v3049_v0 = vld [vmem:[%s4019_s0 + $0x10] sm:$0xff]  }
0x12c5   :  { %2904 = vmatpush3.bf16.msra.mxu0 %v3049_v0  ;;  %v3053_v0 = vld [vmem:[%s3963_s14 + $0x70] sm:$0xff]  }
0x12c6   :  { %v1577_v1 = vmul.f32 1.442695, %v1575_v12  ;;  %2917 = vmatprep.subr.bf16.mxu0 %v3215_v16 }
0x12c7   :  { %v1574_v2 = vpop.xlane.xlu1 %1573 }
0x12c8   :  { %3134 = vpow2.f32 %v1577_v1  ;;  %v1576_v3 = vsub.f32 %v1566_v45, %v1574_v2 }
0x12ca   :  { %v1579_v4 = vmul.f32 1.442695, %v1576_v3 }
0x12cb   :  { %v1692_v15 = vpop.xlane.xlu0 %1691 }
0x12cc   :  { %3136 = vpow2.f32 %v1579_v4  ;;  %v1696_v62 = vsub.f32 %v1684_v50, %v1692_v15 }
0x12cd   :  { %v3131_v5 = vpop.eup %3130 }
0x12ce   :  { %v1698_v6 = vmul.f32 1.442695, %v1696_v62  ;;  %v1460_v63 = vsel %vm382_vm13, %v3131_v5, 0.0 }
0x12cf   :  { %1461 = vadd.xlane.f32.xlu0 %v1460_v63  ;;  %v1695_v19 = vpop.xlane.xlu1 %1694 }
0x12d0   :  { %3138 = vpow2.f32 %v1698_v6  ;;  %v1697_v20 = vsub.f32 %v1687_v54, %v1695_v19 }
0x12d1   :  { %v3133_v7 = vpop.eup %3132 }
0x12d2   :  { %v1463_v9 = vsel %vm382_vm13, %v3133_v7, 0.0  ;;  %v1700_v23 = vmul.f32 1.442695, %v1697_v20 }
0x12d3   :  { %1464 = vadd.xlane.f32.xlu1 %v1463_v9 }
0x12d4   :  { %3140 = vpow2.f32 %v1700_v23 }
0x12d5   :  { %v3135_v10 = vpop.eup %3134 }
0x12d6   :  { %v1581_v11 = vsel %vm382_vm13, %v3135_v10, 0.0 }
0x12d7   :  { %1582 = vadd.xlane.f32.xlu0 %v1581_v11 }
0x12d9   :  { %v3137_v13 = vpop.eup %3136 }
0x12da   :  { %v1584_v14 = vsel %vm382_vm13, %v3137_v13, 0.0 }
0x12db   :  { %1585 = vadd.xlane.f32.xlu1 %v1584_v14 }
0x12dd   :  { %v3139_v17 = vpop.eup %3138 }
0x12de   :  { %v1702_v18 = vsel %vm382_vm13, %v3139_v17, 0.0 }
0x12df   :  { %1703 = vadd.xlane.f32.xlu0 %v1702_v18 }
0x12e1   :  { %v3141_v21 = vpop.eup %3140 }
0x12e2   :  { %v1705_v22 = vsel %vm382_vm13, %v3141_v21, 0.0 }
0x12ec   :  { %1592 = vrot.lane.b32.xlu1 %v3676_v49, %s4028_s1 }
0x12f5   :  { %1471 = vrot.lane.b32.xlu0 %v3676_v49, %s4029_s29 }
0x1310   :  { %1706 = vadd.xlane.f32.xlu1 %v1705_v22 }
0x1321   :  { %1713 = vrot.lane.b32.xlu1 %v3676_v49, %s4030_s27 }
0x1358   :  { %v1462_v24 = vpop.xlane.xlu0 %1461 }
0x1359   :  { %3142 = vrcp.f32 %v1462_v24 }
0x135c   :  { %v1465_v25 = vpop.xlane.xlu1 %1464 }
0x135d   :  { %3144 = vrcp.f32 %v1465_v25 }
0x1360   :  { %v1583_v27 = vpop.xlane.xlu0 %1582 }
0x1361   :  { %3146 = vrcp.f32 %v1583_v27 }
0x1364   :  { %v1586_v29 = vpop.xlane.xlu1 %1585 }
0x1365   :  { %3148 = vrcp.f32 %v1586_v29 }
0x1366   :  { %v3143_v30 = vpop.eup %3142 }
0x1367   :  { %v1468_v33 = vmul.f32 %v3143_v30, %v3131_v5 }
0x1368   :  { %v1704_v31 = vpop.xlane.xlu0 %1703  ;;  %v1593_v49 = vpop.permute.xlu1 %1592 }
0x1369   :  { %3150 = vrcp.f32 %v1704_v31 }
0x136a   :  { %v3145_v32 = vpop.eup %3144 }
0x136b   :  { %v1469_v34 = vmul.f32 %v3145_v32, %v3133_v7 }
0x136c   :  { %v1472_v35 = vpop.permute.xlu0 %1471 }
0x136d   :  { %2872 = vmatpush3.bf16.msra.mxu1 %v1472_v35  ;;  %v1470_v36 = vpack.c.bf16 %v1469_v34, %v1468_v33 }
0x136e   :  { %2883 = vmatprep.subr.bf16.mxu1 %v3215_v16  ;;  %v3147_v37 = vpop.eup %3146 }
0x136f   :  { %v1589_v41 = vmul.f32 %v3147_v37, %v3135_v10 }
0x1370   :  { %2874 = vmatmul.mubr.msk.bf16.vlgmr.msra.gmra.mxu1 %vm382_vm13, %v1470_v36 }
0x1371   :  { %2884 = vmatpush3.bf16.msra.mxu1 %v1593_v49  ;;  %2885 = vmatprep.mubr.msk.bf16.mxu1 %vm3216_vm11, %v3215_v16 }
0x1372   :  { %v3149_v38 = vpop.eup %3148  ;;  %2895 = vmatprep.subr.bf16.mxu1 %v3215_v16 }
0x1373   :  { %v1590_v42 = vmul.f32 %v3149_v38, %v3137_v13 }
0x1375   :  { %v1591_v43 = vpack.c.bf16 %v1590_v42, %v1589_v41 }
0x1376   :  { %v3151_v46 = vpop.eup %3150 }
0x1377   :  { %v1710_v48 = vmul.f32 %v3151_v46, %v3139_v17 }
0x1378   :  { %2886 = vmatmul.mubr.msk.bf16.vlgmr.msra.gmra.mxu1 %vm382_vm13, %v1591_v43  ;;  %v3051_v43 = vld [vmem:[%s3961_s12 + $0x10] sm:$0xff]  }
0x1379   :  { %2897 = vmatprep.mubr.msk.bf16.mxu1 %vm3216_vm11, %v3215_v16 }
0x1399   :  { %v1707_v44 = vpop.xlane.xlu1 %1706 }
0x139a   :  { %3152 = vrcp.f32 %v1707_v44 }
0x139d   :  { %v1714_v45 = vpop.permute.xlu1 %1713 }
0x139e   :  { %2896 = vmatpush3.bf16.msra.mxu1 %v1714_v45 }
0x139f   :  { %2909 = vmatprep.subr.bf16.mxu1 %v3215_v16 }
0x13a7   :  { %v3153_v47 = vpop.eup %3152 }
0x13a8   :  { %v1711_v50 = vmul.f32 %v3153_v47, %v3141_v21 }
0x13aa   :  { %v1712_v53 = vpack.c.bf16 %v1711_v50, %v1710_v48 }
0x13ac   :  { %2898 = vmatmul.mubr.msk.bf16.vlgmr.msra.gmra.mxu1 %vm382_vm13, %v1712_v53 }
0x13ad   :  { %2913 = vmatprep.mubr.msk.bf16.mxu1 %vm3216_vm11, %v3215_v16 }
0x1430   :  { %v1511_v51 = vpop.f32.mrf.mxu1 }
0x1432   :  { %v2875_v52 = vpop.f32.mrf.mxu1 }
0x1433   :  { %v2580_v52 = vld [vmem:[%s4021_s3 + $0x1] ss:$0 sm:$0xff] }
0x1434   :  { %v1514_v54 = vpop.f32.mrf.mxu1 }
0x1435   :  { %v3017_v56 = vpack.i.bf16 %v1514_v54, %v1511_v51 }
0x1436   :  { %v2876_v57 = vpop.f32.mrf.mxu1 }
0x1437   :  { %3018 = vrot.lane.b32.xlu0 %v3017_v56, %s4031_s8  ;;  %v2581_v57 = vld [vmem:[%s3960_s11 + $0x1] ss:$0 sm:$0xff] }
0x1438   :  { %v1632_v58 = vpop.f32.mrf.mxu1 }
0x143a   :  { %v2887_v59 = vpop.f32.mrf.mxu1 }
0x143c   :  { %v1635_v60 = vpop.f32.mrf.mxu1 }
0x143d   :  { %v3022_v61 = vpack.i.bf16 %v1635_v60, %v1632_v58 }
0x143e   :  { %v2888_v8 = vpop.f32.mrf.mxu1 }
0x143f   :  { %3023 = vrot.lane.b32.xlu1 %v3022_v61, %s4032_s4  ;;  %v3052_v8 = vld [vmem:[%s3963_s14 + $0x78] sm:$0xff]  }
0x146c   :  { %v1753_v12 = vpop.f32.mrf.mxu1 }
0x146e   :  { %v2899_v1 = vpop.f32.mrf.mxu1 }
0x146f   :  { %v3055_v1 = vld [vmem:[%s3963_s14 + $0x60] sm:$0xff]  }
0x1470   :  { %v1756_v2 = vpop.f32.mrf.mxu1 }
0x1471   :  { %v3027_v3 = vpack.i.bf16 %v1756_v2, %v1753_v12  ;;  %v3054_v12 = vld [vmem:[%s3963_s14 + $0x68] sm:$0xff]   ;;  %v3056_v2 = vld [vmem:[%s3963_s14 + $0x58] sm:$0xff]  }
0x1472   :  { %v2900_v4 = vpop.f32.mrf.mxu1 }
0x1473   :  { %3028 = vrot.lane.b32.xlu0 %v3027_v3, %s4033_s7  ;;  %v3057_v3 = vld [vmem:[%s3963_s14 + $0x50] sm:$0xff]   ;;  %v3058_v4 = vld [vmem:[%s3963_s14 + $0x48] sm:$0xff]  }
0x14a9   :  { %v3019_v15 = vpop.permute.xlu0 %3018 }
0x14aa   :  { %v3021_v5 = vunpack.i.h.bf16 %v3019_v15  ;;  %v3020_v6 = vunpack.i.l.bf16 %v3019_v15  ;;  %v3059_v15 = vld [vmem:[%s3963_s14 + $0x40] sm:$0xff]  }
0x14ac   :  { %v1785_v10 = vsel %vm334_vm12, %v3727_v28, %v3021_v5  ;;  %v1784_v11 = vsel %vm334_vm12, %v3725_v26, %v3020_v6  ;;  %v2574_v26 = vld [vmem:[%s4020_s2 + $0x1] ss:$0 sm:$0xff] }
0x14b1   :  { %v3024_v62 = vpop.permute.xlu1 %3023 }
0x14b2   :  { %v3026_v63 = vunpack.i.h.bf16 %v3024_v62  ;;  %v3025_v7 = vunpack.i.l.bf16 %v3024_v62  ;;  %v2587_v62 = vld [vmem:[%s3962_s13 + $0x1] ss:$0 sm:$0xff] }
0x14b4   :  { %v1787_v17 = vsel %vm382_vm13, %v1785_v10, %v3026_v63  ;;  %v1786_v18 = vsel %vm382_vm13, %v1784_v11, %v3025_v7 }
0x14e5   :  { %v3029_v9 = vpop.permute.xlu0 %3028 }
0x14e6   :  { %v3031_v13 = vunpack.i.h.bf16 %v3029_v9  ;;  %v3030_v14 = vunpack.i.l.bf16 %v3029_v9 }
0x14e8   :  { %v1789_v19 = vsel %vm844_vm14, %v1787_v17, %v3031_v13  ;;  %v1788_v20 = vsel %vm844_vm14, %v1786_v18, %v3030_v14 }
0x14e9   :  { %v1790_v23 = vpack.c.bf16 %v1789_v19, %v1788_v20 }
0x14eb   :  { %2906 = vmatmul.mubr.msk.bf16.vlgmr.msra.gmra.mxu0 %vm198_vm10, %v1790_v23 }
0x14ec   :  { %2933 = vmatprep.mubr.msk.bf16.mxu0 %vm3216_vm11, %v3215_v16  ;;  %2918 = vmatpush3.bf16.msra.mxu0 %v3052_v8 }
0x14ed   :  { %2919 = vmatprep.subr.bf16.mxu0 %v3215_v16 }
0x14f0   :  { %2920 = vmatpush3.bf16.msra.mxu0 %v3053_v0 }
0x14f1   :  { %2921 = vmatprep.subr.bf16.mxu0 %v3215_v16 }
0x14f4   :  { %2922 = vmatpush3.bf16.msra.mxu0 %v3054_v12 }
0x14f5   :  { %2923 = vmatprep.subr.bf16.mxu0 %v3215_v16 }
0x14f8   :  { %2924 = vmatpush3.bf16.msra.mxu0 %v3055_v1  ;;  %v2619_v1 = vld [vmem:[%s3965_s16 + $0x1] ss:$0 sm:$0xff] }
0x14f9   :  { %2925 = vmatprep.subr.bf16.mxu0 %v3215_v16 }
0x14fc   :  { %2926 = vmatpush3.bf16.msra.mxu0 %v3056_v2 }
0x14fd   :  { %2927 = vmatprep.subr.bf16.mxu0 %v3215_v16 }
0x1500   :  { %2928 = vmatpush3.bf16.msra.mxu0 %v3057_v3 }
0x1501   :  { %2929 = vmatprep.subr.bf16.mxu0 %v3215_v16 }
0x1504   :  { %2930 = vmatpush3.bf16.msra.mxu0 %v3058_v4 }
0x1505   :  { %2931 = vmatprep.subr.bf16.mxu0 %v3215_v16 }
0x1508   :  { %2932 = vmatpush3.bf16.msra.mxu0 %v3059_v15  ;;  %v2620_v15 = vld [vmem:[%s3966_s17 + $0x1] ss:$0 sm:$0xff] }
0x1509   :  { %2973 = vmatprep.subr.bf16.mxu0 %v3215_v16 }
0x15ab   :  { %v1853_v28 = vpop.f32.mrf.mxu0 }
0x15ac   :  { %v1854_v21 = vadd.f32 %v2574_v26, %v1853_v28 }
0x15ad   :  { %v2907_v22 = vpop.f32.mrf.mxu0 }
0x15ae   :  { %v1860_v24 = vadd.f32 %v1854_v21, %v3664_v39 }
0x15af   :  { %v1856_v25 = vpop.f32.mrf.mxu0 }
0x15b0   :  { %v1857_v27 = vadd.f32 %v2574_v26, %v1856_v25  ;;  %v1866_v29 = vsel %vm198_vm10, %v1860_v24, 0.0 }
0x15b1   :  { %1867 = vadd.xlane.f32.xlu1 %v1866_v29  ;;  %v2908_v30 = vpop.f32.mrf.mxu0 }
0x15b2   :  { %v1861_v31 = vadd.f32 %v1857_v27, %v3666_v40  ;;  %v3050_v40 = vld [vmem:[%s3961_s12 + $0x18] sm:$0xff]  }
0x15b3   :  { %2910 = vmatpush3.bf16.msra.mxu1 %v3050_v40 }
0x15b4   :  { %v1869_v32 = vsel %vm198_vm10, %v1861_v31, 0.0  ;;  %2911 = vmatprep.subr.bf16.mxu1 %v3215_v16 }
0x15b5   :  { %1870 = vadd.xlane.f32.xlu0 %v1869_v32 }
0x15b7   :  { %2912 = vmatpush3.bf16.msra.mxu1 %v3051_v43 }
0x15b8   :  { %2937 = vmatprep.subr.bf16.mxu1 %v3215_v16 }
0x163a   :  { %v1868_v33 = vpop.xlane.xlu1 %1867 }
0x163b   :  { %v1872_v34 = vmul.f32 0.03125, %v1868_v33  ;;  %v2608_v33 = vld [vmem:[%s3964_s15 + $0x1] ss:$0 sm:$0xff] }
0x163d   :  { %v1874_v35 = vsub.f32 %v1860_v24, %v1872_v34 }
0x163e   :  { %v1871_v36 = vpop.xlane.xlu0 %1870 }
0x163f   :  { %v1873_v37 = vmul.f32 0.03125, %v1871_v36  ;;  %v1876_v49 = vmul.f32 %v1874_v35, %v1874_v35 }
0x1641   :  { %v1875_v38 = vsub.f32 %v1861_v31, %v1873_v37  ;;  %v1878_v39 = vsel %vm198_vm10, %v1876_v49, 0.0 }
0x1642   :  { %1879 = vadd.xlane.f32.xlu0 %v1878_v39 }
0x1643   :  { %v1877_v41 = vmul.f32 %v1875_v38, %v1875_v38 }
0x1645   :  { %v1881_v42 = vsel %vm198_vm10, %v1877_v41, 0.0 }
0x1646   :  { %1882 = vadd.xlane.f32.xlu1 %v1881_v42 }
0x16cb   :  { %v1880_v44 = vpop.xlane.xlu0 %1879 }
0x16cc   :  { %v1884_v45 = vmul.f32 0.03125, %v1880_v44 }
0x16ce   :  { %v1886_v46 = vadd.f32 1e-12, %v1884_v45 }
0x16cf   :  { %v1883_v47 = vpop.xlane.xlu1 %1882 }
0x16d0   :  { %3154 = vrsqrt.f32 %v1886_v46  ;;  %v1885_v48 = vmul.f32 0.03125, %v1883_v47 }
0x16d2   :  { %v1887_v50 = vadd.f32 1e-12, %v1885_v48 }
0x16d4   :  { %3156 = vrsqrt.f32 %v1887_v50 }
0x16dd   :  { %v3155_v53 = vpop.eup %3154 }
0x16de   :  { %v1890_v51 = vmul.f32 %v3155_v53, %v1874_v35 }
0x16e0   :  { %v1898_v56 = vmul.f32 %v2580_v52, %v1890_v51 }
0x16e1   :  { %v3157_v54 = vpop.eup %3156 }
0x16e2   :  { %v1891_v55 = vmul.f32 %v3157_v54, %v1875_v38  ;;  %v3810_v59 = vadd.f32 %v2581_v57, %v1898_v56  ;;  %v3060_v54 = vld [vmem:[%s3967_s18 + $0x8] sm:$0xff]  }
0x16e4   :  { %v1899_v58 = vmul.f32 %v2580_v52, %v1891_v55  ;;  %v3061_v55 = vld [vmem:[%s3967_s18] sm:$0xff]  }
0x16e6   :  { %v3812_v60 = vadd.f32 %v2581_v57, %v1899_v58 }
0x16e8   :  { %v1908_v61 = vpack.c.bf16 %v3812_v60, %v3810_v59 }
0x16ea   :  { %2914 = vmatmul.mubr.msk.bf16.vlgmr.msra.gmra.mxu1 %vm198_vm10, %v1908_v61 }
0x16eb   :  { %2941 = vmatprep.mubr.msk.bf16.mxu1 %vm3216_vm11, %v3215_v16  ;;  %2938 = vmatpush3.bf16.msra.mxu1 %v3060_v54 }
0x16ec   :  { %2939 = vmatprep.subr.bf16.mxu1 %v3215_v16 }
0x16ef   :  { %2940 = vmatpush3.bf16.msra.mxu1 %v3061_v55 }
0x16f0   :  { %2945 = vmatprep.subr.bf16.mxu1 %v3215_v16 }
0x17aa   :  { %v1971_v5 = vpop.f32.mrf.mxu1 }
0x17ab   :  { %v1972_v6 = vadd.f32 %v2587_v62, %v1971_v5 }
0x17ac   :  { %v2915_v63 = vpop.f32.mrf.mxu1 }
0x17ad   :  { %v1980_v7 = vmul.f32 0.044715, %v1972_v6  ;;  %v1978_v25 = vmul.f32 0.5, %v1972_v6 }
0x17ae   :  { %v1974_v9 = vpop.f32.mrf.mxu1 }
0x17af   :  { %v1982_v10 = vmul.f32 %v1980_v7, %v1972_v6  ;;  %v1975_v11 = vadd.f32 %v2587_v62, %v1974_v9  ;;  %v3062_v7 = vld [vmem:[%s3969_s20 + $0x8] sm:$0xff]  }
0x17b0   :  { %v2916_v13 = vpop.f32.mrf.mxu1 }
0x17b1   :  { %v1984_v14 = vmul.f32 %v1982_v10, %v1972_v6  ;;  %v1981_v17 = vmul.f32 0.044715, %v1975_v11  ;;  %v1979_v27 = vmul.f32 0.5, %v1975_v11  ;;  %v3063_v10 = vld [vmem:[%s3969_s20] sm:$0xff]  }
0x17b3   :  { %v1986_v18 = vadd.f32 %v1984_v14, %v1972_v6  ;;  %v1983_v19 = vmul.f32 %v1981_v17, %v1975_v11 }
0x17b5   :  { %v1988_v20 = vmul.f32 0.7978846, %v1986_v18  ;;  %v1985_v23 = vmul.f32 %v1983_v19, %v1975_v11 }
0x17b7   :  { %3158 = vtanh.f32 %v1988_v20  ;;  %v1987_v26 = vadd.f32 %v1985_v23, %v1975_v11  ;;  %v2621_v11 = vld [vmem:[%s3968_s19] ss:$0 sm:$0xff] }
0x17b8   :  { %v2625_v23 = vld [vmem:[%s3971_s22] ss:$0 sm:$0xff] }
0x17b9   :  { %v1989_v28 = vmul.f32 0.7978846, %v1987_v26 }
0x17bb   :  { %3160 = vtanh.f32 %v1989_v28 }
0x17c4   :  { %v3159_v21 = vpop.eup %3158 }
0x17c5   :  { %v1992_v22 = vadd.f32 1.0, %v3159_v21 }
0x17c7   :  { %v1994_v30 = vmul.f32 %v1992_v22, %v1978_v25 }
0x17c8   :  { %v3161_v24 = vpop.eup %3160 }
0x17c9   :  { %v1993_v29 = vadd.f32 1.0, %v3161_v24 }
0x17cb   :  { %v1995_v31 = vmul.f32 %v1993_v29, %v1979_v27  ;;  %v3064_v27 = vld [vmem:[%s3970_s21 + $0x38] sm:$0xff]   ;;  %v3065_v29 = vld [vmem:[%s3970_s21 + $0x30] sm:$0xff]  }
0x17cd   :  { %v1996_v32 = vpack.c.bf16 %v1995_v31, %v1994_v30  ;;  %v3066_v30 = vld [vmem:[%s3970_s21 + $0x28] sm:$0xff]   ;;  %v3067_v31 = vld [vmem:[%s3970_s21 + $0x20] sm:$0xff]  }
0x17cf   :  { %2934 = vmatmul.mubr.bf16.vlgmr.msra.gmra.mxu0 %v1996_v32 }
0x17d0   :  { %2977 = vmatprep.mubr.msk.bf16.mxu0 %vm3216_vm11, %v3215_v16 }
0x188f   :  { %v2104_v34 = vpop.f32.mrf.mxu0 }
0x1890   :  { %v2105_v35 = vadd.f32 %v2608_v33, %v2104_v34 }
0x1891   :  { %v2935_v36 = vpop.f32.mrf.mxu0 }
0x1892   :  { %v2111_v37 = vadd.f32 %v2105_v35, %v3810_v59 }
0x1893   :  { %v2107_v49 = vpop.f32.mrf.mxu0 }
0x1894   :  { %v2108_v38 = vadd.f32 %v2608_v33, %v2107_v49  ;;  %v2117_v39 = vsel %vm198_vm10, %v2111_v37, 0.0  ;;  %v3069_v49 = vld [vmem:[%s3970_s21 + $0x10] sm:$0xff]  }
0x1895   :  { %2118 = vadd.xlane.f32.xlu1 %v2117_v39  ;;  %v2936_v41 = vpop.f32.mrf.mxu0  ;;  %v3071_v39 = vld [vmem:[%s3970_s21] sm:$0xff]  }
0x1896   :  { %v2112_v42 = vadd.f32 %v2108_v38, %v3812_v60  ;;  %v3070_v38 = vld [vmem:[%s3970_s21 + $0x8] sm:$0xff]  }
0x1897   :  { %v3072_v41 = vld [vmem:[%s3972_s23 + $0x8] sm:$0xff]  }
0x1898   :  { %v2120_v40 = vsel %vm198_vm10, %v2112_v42, 0.0  ;;  %2974 = vmatpush3.bf16.msra.mxu0 %v3072_v41 }
0x1899   :  { %2121 = vadd.xlane.f32.xlu0 %v2120_v40  ;;  %2975 = vmatprep.subr.bf16.mxu0 %v3215_v16 }
0x191e   :  { %v2119_v43 = vpop.xlane.xlu1 %2118 }
0x191f   :  { %v2123_v44 = vmul.f32 0.03125, %v2119_v43 }
0x1921   :  { %v2125_v45 = vsub.f32 %v2111_v37, %v2123_v44  ;;  %v3068_v37 = vld [vmem:[%s3970_s21 + $0x18] sm:$0xff]   ;;  %s3232_s21 = smov [#allocation4]  }
0x1922   :  { %v2122_v46 = vpop.xlane.xlu0 %2121  ;;  %s2500_s16 = sshll.u32 %s3232_s21, 4  ;;  %s2501_s16 = int_to_ptr.vmem [resolvable:$true] %s2500_s16 }
0x1923   :  { %v2124_v47 = vmul.f32 0.03125, %v2122_v46  ;;  %v2127_v48 = vmul.f32 %v2125_v45, %v2125_v45  ;;  %s3170_s17 = scalar_lea.vmem %s2501_s16, 32  ;;  %p3175_p1 = scmp.lt.s32.totalorder %s2501_s16, %s2501_s16 }
0x1924   :  { %p3171_p0 = scmp.ne.s32.totalorder %s2501_s16, %s3170_s17  ;;  %p3176_p2 = scmp.lt.s32.totalorder %s3170_s17, %s3170_s17 }
0x1925   :  { %v2126_v50 = vsub.f32 %v2112_v42, %v2124_v47  ;;  %v2129_v53 = vsel %vm198_vm10, %v2127_v48, 0.0 }
0x1926   :  { %2130 = vadd.xlane.f32.xlu1 %v2129_v53  ;;  %p3177_p3 = por %p3176_p2, %p3175_p1 }
0x1927   :  { %v2128_v51 = vmul.f32 %v2126_v50, %v2126_v50 }
0x1928   :  { %p3178_p4 = pnand %p3177_p3, %p3171_p0 }
0x1929   :  { %v2132_v52 = vsel %vm198_vm10, %v2128_v51, 0.0 }
0x192a   :  { %2133 = vadd.xlane.f32.xlu0 %v2132_v52 }
0x19af   :  { %v2131_v56 = vpop.xlane.xlu1 %2130 }
0x19b0   :  { %v2135_v57 = vmul.f32 0.03125, %v2131_v56 }
0x19b2   :  { %v2137_v58 = vadd.f32 1e-12, %v2135_v57 }
0x19b3   :  { %v2134_v59 = vpop.xlane.xlu0 %2133 }
0x19b4   :  { %3162 = vrsqrt.f32 %v2137_v58  ;;  %v2136_v60 = vmul.f32 0.03125, %v2134_v59 }
0x19b6   :  { %v2138_v61 = vadd.f32 1e-12, %v2136_v60 }
0x19b8   :  { %3164 = vrsqrt.f32 %v2138_v61 }
0x19c1   :  { %v3163_v8 = vpop.eup %3162 }
0x19c2   :  { %v2141_v0 = vmul.f32 %v3163_v8, %v2125_v45  ;;  %v3073_v45 = vld [vmem:[%s3972_s23] sm:$0xff]  }
0x19c3   :  { %2976 = vmatpush3.bf16.msra.mxu0 %v3073_v45 }
0x19c4   :  { %v2149_v3 = vmul.f32 %v2619_v1, %v2141_v0 }
0x19c5   :  { %v3165_v12 = vpop.eup %3164 }
0x19c6   :  { %v2142_v2 = vmul.f32 %v3165_v12, %v2126_v50  ;;  %v2157_v5 = vadd.f32 %v2620_v15, %v2149_v3 }
0x19c8   :  { %v2150_v4 = vmul.f32 %v2619_v1, %v2142_v2 }
0x19ca   :  { %v2158_v62 = vadd.f32 %v2620_v15, %v2150_v4 }
0x19cc   :  { %v2160_v6 = vrot.slane %v2158_v62, 7 }
0x19ce   :  { %v2163_v63 = vsel %vm2162_vm15, %v2157_v5, %v2160_v6 }
0x19cf   :  { %v2164_v9 = vpack.c.bf16 %v2163_v63, %v2163_v63 }
0x19d1   :  { %2942 = vmatmul.mubr.msk.bf16.vlgmr.msra.gmra.mxu1 %vm198_vm10, %v2164_v9 }
0x19d2   :  { %2946 = vmatpush3.bf16.msra.mxu1 %v3062_v7  ;;  %2949 = vmatprep.mubr.msk.bf16.mxu1 %vm3216_vm11, %v3215_v16 }
0x19d3   :  { %2947 = vmatprep.subr.bf16.mxu1 %v3215_v16 }
0x19d6   :  { %2948 = vmatpush3.bf16.msra.mxu1 %v3063_v10 }
0x19d7   :  { %2953 = vmatprep.subr.bf16.mxu1 %v3215_v16 }
0x1a91   :  { %v2225_v13 = vpop.f32.mrf.mxu1 }
0x1a92   :  { %v2226_v14 = vadd.f32 %v2621_v11, %v2225_v13 }
0x1a93   :  { %v2943_v17 = vpop.f32.mrf.mxu1 }
0x1a94   :  { %v2231_v18 = vpack.c.bf16 %v2226_v14, %v2226_v14 }
0x1a95   :  { %v2228_v19 = vpop.f32.mrf.mxu1 }
0x1a96   :  { %2950 = vmatmul.mubr.msk.bf16.vlgmr.msra.gmra.mxu1 %vm198_vm10, %v2231_v18 }
0x1a97   :  { %v2944_v20 = vpop.f32.mrf.mxu1  ;;  %2969 = vmatprep.mubr.msk.bf16.mxu1 %vm3216_vm11, %v3215_v16  ;;  %2954 = vmatpush3.bf16.msra.mxu1 %v3064_v27 }
0x1a98   :  { %2955 = vmatprep.subr.bf16.mxu1 %v3215_v16 }
0x1a9b   :  { %2956 = vmatpush3.bf16.msra.mxu1 %v3065_v29 }
0x1a9c   :  { %2957 = vmatprep.subr.bf16.mxu1 %v3215_v16 }
0x1a9f   :  { %2958 = vmatpush3.bf16.msra.mxu1 %v3066_v30 }
0x1aa0   :  { %2959 = vmatprep.subr.bf16.mxu1 %v3215_v16 }
0x1aa3   :  { %2960 = vmatpush3.bf16.msra.mxu1 %v3067_v31 }
0x1aa4   :  { %2961 = vmatprep.subr.bf16.mxu1 %v3215_v16 }
0x1aa7   :  { %2962 = vmatpush3.bf16.msra.mxu1 %v3068_v37 }
0x1aa8   :  { %2963 = vmatprep.subr.bf16.mxu1 %v3215_v16 }
0x1aab   :  { %2964 = vmatpush3.bf16.msra.mxu1 %v3069_v49 }
0x1aac   :  { %2965 = vmatprep.subr.bf16.mxu1 %v3215_v16 }
0x1aaf   :  { %2966 = vmatpush3.bf16.msra.mxu1 %v3070_v38 }
0x1ab0   :  { %2967 = vmatprep.subr.bf16.mxu1 %v3215_v16 }
0x1ab3   :  { %2968 = vmatpush3.bf16.msra.mxu1 %v3071_v39 }
0x1b56   :  { %v2292_v26 = vpop.f32.mrf.mxu1 }
0x1b57   :  { %v2293_v28 = vadd.f32 %v2625_v23, %v2292_v26 }
0x1b58   :  { %v2951_v21 = vpop.f32.mrf.mxu1 }
0x1b59   :  { %v2298_v22 = vsel %vm117_vm1, %v2293_v28, -inf }
0x1b5a   :  { %2299 = vmax.xlane.f32.xlu0 %v2298_v22  ;;  %v2295_v24 = vpop.f32.mrf.mxu1 }
0x1b5c   :  { %v2952_v25 = vpop.f32.mrf.mxu1 }
0x1be3   :  { %v2300_v32 = vpop.xlane.xlu0 %2299 }
0x1be4   :  { %v2301_v33 = vsub.f32 %v2293_v28, %v2300_v32 }
0x1be6   :  { %v2302_v34 = vmul.f32 1.442695, %v2301_v33 }
0x1be8   :  { %3166 = vpow2.f32 %v2302_v34 }
0x1bf5   :  { %v3167_v35 = vpop.eup %3166 }
0x1bf6   :  { %v2304_v36 = vsel %vm117_vm1, %v3167_v35, 0.0 }
0x1bf7   :  { %2305 = vadd.xlane.f32.xlu1 %v2304_v36 }
0x1c80   :  { %v2306_v42 = vpop.xlane.xlu1 %2305 }
0x1c81   :  { %3168 = vrcp.f32 %v2306_v42 }
0x1c8e   :  { %v3169_v40 = vpop.eup %3168 }
0x1c8f   :  { %v2308_v43 = vmul.f32 %v3169_v40, %v3167_v35 }
0x1c91   :  { %v2309_v44 = vpack.c.bf16 %v2308_v43, %v2308_v43  ;;  %2483 = vst [vmem:[#allocation4] sm:$0x3] %v2308_v43 }
0x1c93   :  { %2970 = vmatmul.mubr.bf16.vlgmr.msra.gmra.mxu1 %v2309_v44 }
0x1d53   :  { %v2408_v46 = vpop.f32.mrf.mxu1 }
0x1d54   :  { %v2414_v47 = vadd.f32 %v2408_v46, %v2226_v14 }
0x1d55   :  { %v2971_v48 = vpop.f32.mrf.mxu1 }
0x1d56   :  { %v2415_v50 = vpack.c.bf16 %v2414_v47, %v2414_v47 }
0x1d57   :  { %v2411_v53 = vpop.f32.mrf.mxu1 }
0x1d58   :  { %2978 = vmatmul.mubr.msk.bf16.vlgmr.msra.gmra.mxu0 %vm198_vm10, %v2415_v50 }
0x1d59   :  { %v2972_v16 = vpop.f32.mrf.mxu1 }
0x1d5a   :  { %3181 = shalt.err (!%p3178_p4)
}
0x1d5b   :  { %2503 = dma.vmem_to_hbm [thread:$0]  %s2501_s16, 32, %s3975_s26, [#allocation5]   ;;  %v2637_v51 = vld [vmem:[%s3973_s24] ss:$0 sm:$0xff] }
0x1d5c   :  { %s3233_s20 = smov [#allocation2]  }
0x1d5d   :  { %s2490_s19 = sshll.u32 %s3233_s20, 4  ;;  %s2491_s19 = int_to_ptr.vmem [resolvable:$true] %s2490_s19 }
0x1d5e   :  { %s3190_s29 = scalar_lea.vmem %s2491_s19, 32  ;;  %p3195_p6 = scmp.lt.s32.totalorder %s2491_s19, %s2491_s19 }
0x1d5f   :  { %p3191_p5 = scmp.ne.s32.totalorder %s2491_s19, %s3190_s29  ;;  %p3196_p7 = scmp.lt.s32.totalorder %s3190_s29, %s3190_s29 }
0x1d61   :  { %p3197_p8 = por %p3196_p7, %p3195_p6 }
0x1d63   :  { %p3198_p9 = pnand %p3197_p8, %p3191_p5 }
0x1e18   :  { %v2476_v52 = vpop.f32.mrf.mxu0 }
0x1e19   :  { %v2477_v54 = vadd.f32 %v2637_v51, %v2476_v52 }
0x1e1a   :  { %v2979_v55 = vpop.f32.mrf.mxu0 }
0x1e1b   :  { %2482 = vst [vmem:[#allocation2] sm:$0x3] %v2477_v54 }
0x1e1c   :  { %v2479_v56 = vpop.f32.mrf.mxu0 }
0x1e1d   :  { %3201 = shalt.err (!%p3198_p9)
}
0x1e1e   :  { %2493 = dma.vmem_to_hbm [thread:$0]  %s2491_s19, 32, %s3974_s25, [#allocation3]   ;;  %v2980_v57 = vpop.f32.mrf.mxu0 }
0x1e1f   :  { %3210 = dma.done.wait [#allocation3], 32  }
0x1e20   :  { %3211 = vsyncadd [#allocation3], 4294967264 }
0x1e21   :  { %3212 = dma.done.wait [#allocation5], 32  }
0x1e22   :  { %3213 = vsyncadd [#allocation5], 4294967264 }
0x1e23   :  { %2510 = vsyncpa [#allocation3], 1 }
0x1e24   :  { %2511 = vsyncpa [#allocation5], 1 }

</bundles_post_ra>
